<compile_context>
chip_gen: v7x
topology: tpu7x:2x2x1
jax: 0.10.0
libtpu: 0.0.40
codegen_flags: <defaults>
</compile_context>

<pallas_src>
import functools

import jax
import jax.numpy as jnp
from jax import lax
from jax.experimental import pallas as pl
from jax.experimental.pallas import tpu as pltpu


# -----------------------------------------------------------------------------
# Fused Pallas kernel
# -----------------------------------------------------------------------------
def _fused_kernel(x_ref, s1_ref, b1_ref, w1_ref, b2_ref, w2_ref, b3_ref,
                  w3_ref, ws_ref, o_ref, *, tho, h2, w2n):
    """Computes a (tho, W/2) tile of ResidualBlockDown output entirely in VMEM.

    x_ref holds the full zero-padded space-to-depth(2) image for this batch
    element; the row tile plus a 1-row halo is sliced in-kernel.
    """
    rows = tho + 2                      # s2d rows needed (1-row halo each side)
    wp2 = w2n + 2
    r0 = pl.multiple_of(pl.program_id(1) * tho, tho)

    xs = x_ref[pl.ds(r0, rows), :, :]                    # (rows, wp2, 4*Cin) f32

    # ---- stage 1: BN1 + ReLU, 1x1 conv (BN2 scale folded), bias, ReLU -------
    h1 = jnp.maximum(xs * s1_ref[...] + b1_ref[...], 0.0)
    c4in = h1.shape[-1]
    h1f = h1.reshape(rows * wp2, c4in).astype(jnp.bfloat16)
    t = jnp.dot(h1f, w1_ref[...], preferred_element_type=jnp.float32)
    t = jnp.maximum(t + b2_ref[...], 0.0)
    c4mid = t.shape[-1]
    t = t.reshape(rows, wp2, c4mid)

    # conv2 zero-pads `t` (not x): zero the border / out-of-image positions.
    row_g = r0 + lax.broadcasted_iota(jnp.int32, (rows, wp2, c4mid), 0)
    col_g = lax.broadcasted_iota(jnp.int32, (rows, wp2, c4mid), 1)
    valid = (row_g >= 1) & (row_g <= h2) & (col_g >= 1) & (col_g <= w2n)
    t = jnp.where(valid, t, 0.0)

    # ---- stage 2: 4x4/s2 conv on t == 3x3/s1 conv in s2d layout, BN3+ReLU ---
    m = tho * w2n
    cmid = w2_ref.shape[-1]
    acc = jnp.zeros((m, cmid), jnp.float32)
    for dr in range(3):
        for dc in range(3):
            tt = t[dr:dr + tho, dc:dc + w2n, :].reshape(m, c4mid)
            acc = acc + jnp.dot(tt.astype(jnp.bfloat16), w2_ref[dr * 3 + dc],
                                preferred_element_type=jnp.float32)
    h2a = jnp.maximum(acc + b3_ref[...], 0.0).astype(jnp.bfloat16)

    # ---- stage 3: final 1x1 conv + 4x4/s2 shortcut, single accumulator ------
    out = jnp.dot(h2a, w3_ref[...], preferred_element_type=jnp.float32)
    for dr in range(3):
        for dc in range(3):
            xx = xs[dr:dr + tho, dc:dc + w2n, :].reshape(m, c4in)
            out = out + jnp.dot(xx.astype(jnp.bfloat16), ws_ref[dr * 3 + dc],
                                preferred_element_type=jnp.float32)

    o_ref[...] = out.reshape(tho, w2n, -1).astype(o_ref.dtype)


# -----------------------------------------------------------------------------
# Parameter / layout prep (done once at trace time, plain JAX)
# -----------------------------------------------------------------------------
def _fold_bn(gamma, beta, mean, var, eps=1e-5):
    scale = gamma / jnp.sqrt(var + eps)
    return scale, beta - mean * scale


def _space_to_depth2(x_nhwc):
    n, h, w, c = x_nhwc.shape
    x = x_nhwc.reshape(n, h // 2, 2, w // 2, 2, c)
    x = jnp.transpose(x, (0, 1, 3, 2, 4, 5))
    return x.reshape(n, h // 2, w // 2, 4 * c)


# (s2d tap offset, sub-position) -> original 4x4 kernel index (else unused).
_S2D_TAP = {(0, 1): 0, (1, 0): 1, (1, 1): 2, (2, 0): 3}


def _s2d_conv_weight(w_oihw):
    """4x4/stride-2/pad-1 conv weight (O,I,4,4) -> 9 taps of an equivalent
    3x3/stride-1 conv over the space-to-depth(2) grid, each a (4*I, O) matrix."""
    o, i = w_oihw.shape[:2]
    blocks = []
    for dr in range(3):
        for dc in range(3):
            blk = jnp.zeros((2, 2, i, o), w_oihw.dtype)
            for dh in range(2):
                for dw in range(2):
                    kh = _S2D_TAP.get((dr, dh))
                    kw = _S2D_TAP.get((dc, dw))
                    if kh is not None and kw is not None:
                        blk = blk.at[dh, dw].set(w_oihw[:, :, kh, kw].T)
            blocks.append(blk.reshape(4 * i, o))
    return jnp.stack(blocks)                                     # (9, 4*I, O)


def _pick_row_tile(h2, w2n, c4in, c4mid, cout):
    """Largest output-row tile that (a) gives >=~2048 matmul rows per grid step
    and (b) keeps the per-tile working set well under the default 32 MiB
    scoped-VMEM limit (safe on v5e/v6e/v7x without raising vmem_limit_bytes)."""
    target_rows = 2048
    tho = max(1, target_rows // max(w2n, 1))
    bytes_per_out_row = ((w2n + 2) * (c4in * 4 + c4mid * 6)
                         + w2n * (c4mid + cout) * 4)
    budget = 8 * 1024 * 1024
    tho = min(tho, max(1, budget // max(bytes_per_out_row, 1)), h2)
    return tho


def residual_block_down(x_nchw, params):
    """Forward pass of ResidualBlockDown. Input/output are NCHW float32."""
    n, cin, h, w = x_nchw.shape
    assert h % 2 == 0 and w % 2 == 0, "spatial dims must be even (stride-2 conv)"
    h2, w2n = h // 2, w // 2

    s1, b1 = _fold_bn(*params["bn1"])
    s2, b2 = _fold_bn(*params["bn2"])
    s3, b3 = _fold_bn(*params["bn3"])

    cmid = params["conv1"].shape[0]
    cout = params["conv3"].shape[0]
    c4in, c4mid = 4 * cin, 4 * cmid
    bf = jnp.bfloat16

    # Weight prep: fold BN2 scale into conv1, BN3 scale into conv2, build the
    # space-to-depth forms, and cast MXU operands to bf16.
    w1 = params["conv1"][:, :, 0, 0].T * s2[None, :]                 # (Cin, Cmid)
    w1_s2d = jnp.kron(jnp.eye(4, dtype=w1.dtype), w1).astype(bf)     # (4Cin, 4Cmid)
    w2_s2d = _s2d_conv_weight(
        params["conv2"] * s3[:, None, None, None]).astype(bf)        # (9, 4Cmid, Cmid)
    w3 = params["conv3"][:, :, 0, 0].T.astype(bf)                    # (Cmid, Cout)
    ws_s2d = _s2d_conv_weight(params["shortcut"]).astype(bf)         # (9, 4Cin, Cout)

    s1_4 = jnp.tile(s1, 4).reshape(1, 1, c4in).astype(jnp.float32)
    b1_4 = jnp.tile(b1, 4).reshape(1, 1, c4in).astype(jnp.float32)
    b2_4 = jnp.tile(b2, 4).reshape(1, c4mid).astype(jnp.float32)
    b3_r = b3.reshape(1, cmid).astype(jnp.float32)

    # Layout: NCHW -> NHWC -> space-to-depth(2) -> zero pad (conv pad + row-tile pad).
    x = jnp.transpose(x_nchw, (0, 2, 3, 1)).astype(jnp.float32)
    xs2d = _space_to_depth2(x)                                       # (N, H2, W2, 4Cin)

    tho = _pick_row_tile(h2, w2n, c4in, c4mid, cout)
    n_tiles = pl.cdiv(h2, tho)
    hpad2 = n_tiles * tho
    xp = jnp.pad(xs2d, ((0, 0), (1, 1 + hpad2 - h2), (1, 1), (0, 0)))
    wp2 = w2n + 2

    kernel = functools.partial(_fused_kernel, tho=tho, h2=h2, w2n=w2n)

    out = pl.pallas_call(
        kernel,
        out_shape=jax.ShapeDtypeStruct((n, hpad2, w2n, cout), jnp.float32),
        grid_spec=pltpu.PrefetchScalarGridSpec(
            num_scalar_prefetch=0,
            grid=(n, n_tiles),
            in_specs=[
                # Full padded s2d image stays VMEM-resident across row tiles.
                pl.BlockSpec((None, hpad2 + 2, wp2, c4in),
                             lambda b, i: (b, 0, 0, 0)),
                pl.BlockSpec((1, 1, c4in), lambda b, i: (0, 0, 0)),
                pl.BlockSpec((1, 1, c4in), lambda b, i: (0, 0, 0)),
                pl.BlockSpec((c4in, c4mid), lambda b, i: (0, 0)),
                pl.BlockSpec((1, c4mid), lambda b, i: (0, 0)),
                pl.BlockSpec((9, c4mid, cmid), lambda b, i: (0, 0, 0)),
                pl.BlockSpec((1, cmid), lambda b, i: (0, 0)),
                pl.BlockSpec((cmid, cout), lambda b, i: (0, 0)),
                pl.BlockSpec((9, c4in, cout), lambda b, i: (0, 0, 0)),
            ],
            out_specs=pl.BlockSpec((None, tho, w2n, cout),
                                   lambda b, i: (b, i, 0, 0)),
        ),
        compiler_params=pltpu.CompilerParams(
            dimension_semantics=("parallel", "parallel")),
    )(xp, s1_4, b1_4, w1_s2d, b2_4, w2_s2d, b3_r, w3, ws_s2d)

    out = out[:, :h2]                                   # crop row-tile padding
    return jnp.transpose(out, (0, 3, 1, 2))             # back to NCHW


# -----------------------------------------------------------------------------
# Pure-JAX reference (lax convs, NCHW) for correctness checking
# -----------------------------------------------------------------------------
def _bn_ref(x_nchw, gamma, beta, mean, var, eps=1e-5):
    rs = lambda v: v.reshape(1, -1, 1, 1)
    return (x_nchw - rs(mean)) / jnp.sqrt(rs(var) + eps) * rs(gamma) + rs(beta)


def _conv_ref(x_nchw, w_oihw, stride, pad):
    return lax.conv_general_dilated(
        x_nchw, w_oihw, window_strides=(stride, stride),
        padding=[(pad, pad), (pad, pad)],
        dimension_numbers=("NCHW", "OIHW", "NCHW"),
        precision=lax.Precision.HIGHEST)


def residual_block_down_ref(x, p):
    h = jnp.maximum(_bn_ref(x, *p["bn1"]), 0.0)
    h = _conv_ref(h, p["conv1"], 1, 0)
    h = jnp.maximum(_bn_ref(h, *p["bn2"]), 0.0)
    h = _conv_ref(h, p["conv2"], 2, 1)
    h = jnp.maximum(_bn_ref(h, *p["bn3"]), 0.0)
    left = _conv_ref(h, p["conv3"], 1, 0)
    shortcut = _conv_ref(x, p["shortcut"], 2, 1)
    return left + shortcut


# -----------------------------------------------------------------------------
def _make_params(key, cin, cmid, cout):
    ks = jax.random.split(key, 16)
    bn = lambda k, c: (
        jax.random.uniform(k, (c,), jnp.float32, 0.5, 1.5),          # gamma
        0.1 * jax.random.normal(jax.random.fold_in(k, 1), (c,)),     # beta
        0.1 * jax.random.normal(jax.random.fold_in(k, 2), (c,)),     # running_mean
        jax.random.uniform(jax.random.fold_in(k, 3), (c,), jnp.float32,
                           0.5, 1.5),                                # running_var
    )
    return {
        "bn1": bn(ks[0], cin),
        "conv1": 0.2 * jax.random.normal(ks[1], (cmid, cin, 1, 1), jnp.float32),
        "bn2": bn(ks[2], cmid),
        "conv2": 0.1 * jax.random.normal(ks[3], (cmid, cmid, 4, 4), jnp.float32),
        "bn3": bn(ks[4], cmid),
        "conv3": 0.2 * jax.random.normal(ks[5], (cout, cmid, 1, 1), jnp.float32),
        "shortcut": 0.1 * jax.random.normal(ks[6], (cout, cin, 4, 4),
                                            jnp.float32),
    }


if __name__ == "__main__":
    key = jax.random.PRNGKey(0)
    kx, kp = jax.random.split(key)

    N, CIN, CMID, COUT, H, W = 2, 4, 8, 8, 16, 16
    x = jax.random.normal(kx, (N, CIN, H, W), jnp.float32)
    params = _make_params(kp, CIN, CMID, COUT)

    out = jax.block_until_ready(residual_block_down(x, params))
    ref = jax.block_until_ready(residual_block_down_ref(x, params))

    assert out.shape == (N, COUT, H // 2, W // 2), out.shape
    # bf16 MXU operands with f32 accumulation against a HIGHEST-precision f32
    # reference: expected max error ~1e-2; a real bug (wrong tap mapping, wrong
    # padding mask) produces O(1) errors, so 5e-2 still discriminates.
    err = float(jnp.max(jnp.abs(out - ref)))
    assert jnp.allclose(out, ref, atol=5e-2, rtol=2e-2), err
    print("KERNEL_OK")
</pallas_src>

<mosaic_0001>
module attributes {stable_mosaic.version = 11 : i64} {
  func.func @_fused_kernel(%arg0: i32, %arg1: i32, %arg2: memref<1x10x10x16xf32, #tpu.memory_space<vmem>>, %arg3: memref<1x1x16xf32, #tpu.memory_space<vmem>>, %arg4: memref<1x1x16xf32, #tpu.memory_space<vmem>>, %arg5: memref<16x32xbf16, #tpu.memory_space<vmem>>, %arg6: memref<1x32xf32, #tpu.memory_space<vmem>>, %arg7: memref<9x32x8xbf16, #tpu.memory_space<vmem>>, %arg8: memref<1x8xf32, #tpu.memory_space<vmem>>, %arg9: memref<8x8xbf16, #tpu.memory_space<vmem>>, %arg10: memref<9x16x8xbf16, #tpu.memory_space<vmem>>, %arg11: memref<1x8x8x8xf32, #tpu.memory_space<vmem>>) attributes {dimension_semantics = [#tpu.dimension_semantics<parallel>, #tpu.dimension_semantics<parallel>], iteration_bounds = array<i64: 2, 1>, scalar_prefetch = 0 : i64, scratch_operands = 0 : i64, tpu.core_type = #tpu.core_type<tc>, window_params = [{transform_indices = @transform_0, window_bounds = array<i64: 1, 10, 10, 16>}, {pipeline_mode = #tpu.pipeline_mode<synchronous>, transform_indices = @transform_1, window_bounds = array<i64: 1, 1, 16>}, {pipeline_mode = #tpu.pipeline_mode<synchronous>, transform_indices = @transform_2, window_bounds = array<i64: 1, 1, 16>}, {pipeline_mode = #tpu.pipeline_mode<synchronous>, transform_indices = @transform_3, window_bounds = array<i64: 16, 32>}, {pipeline_mode = #tpu.pipeline_mode<synchronous>, transform_indices = @transform_4, window_bounds = array<i64: 1, 32>}, {pipeline_mode = #tpu.pipeline_mode<synchronous>, transform_indices = @transform_5, window_bounds = array<i64: 9, 32, 8>}, {pipeline_mode = #tpu.pipeline_mode<synchronous>, transform_indices = @transform_6, window_bounds = array<i64: 1, 8>}, {pipeline_mode = #tpu.pipeline_mode<synchronous>, transform_indices = @transform_7, window_bounds = array<i64: 8, 8>}, {pipeline_mode = #tpu.pipeline_mode<synchronous>, transform_indices = @transform_8, window_bounds = array<i64: 9, 16, 8>}, {transform_indices = @transform_9, window_bounds = array<i64: 1, 8, 8, 8>}]} {
    %c8_i32 = arith.constant 8 : i32
    %0 = arith.muli %arg1, %c8_i32 : i32
    %1 = tpu.assume_multiple %0, 8 : i32
    %c0 = arith.constant 0 : index
    %2 = arith.index_cast %1 : i32 to index
    %c0_0 = arith.constant 0 : index
    %c0_1 = arith.constant 0 : index
    %3 = vector.load %arg2[%c0, %2, %c0_0, %c0_1] : memref<1x10x10x16xf32, #tpu.memory_space<vmem>>, vector<1x10x10x16xf32>
    %4 = vector.shape_cast %3 : vector<1x10x10x16xf32> to vector<10x10x16xf32>
    %c0_2 = arith.constant 0 : index
    %c0_3 = arith.constant 0 : index
    %c0_4 = arith.constant 0 : index
    %5 = vector.load %arg3[%c0_2, %c0_3, %c0_4] : memref<1x1x16xf32, #tpu.memory_space<vmem>>, vector<1x1x16xf32>
    %6 = vector.broadcast %5 : vector<1x1x16xf32> to vector<10x10x16xf32>
    %7 = arith.mulf %4, %6 : vector<10x10x16xf32>
    %c0_5 = arith.constant 0 : index
    %c0_6 = arith.constant 0 : index
    %c0_7 = arith.constant 0 : index
    %8 = vector.load %arg4[%c0_5, %c0_6, %c0_7] : memref<1x1x16xf32, #tpu.memory_space<vmem>>, vector<1x1x16xf32>
    %9 = vector.broadcast %8 : vector<1x1x16xf32> to vector<10x10x16xf32>
    %10 = arith.addf %7, %9 : vector<10x10x16xf32>
    %cst = arith.constant 0.000000e+00 : f32
    %11 = vector.broadcast %cst : f32 to vector<10x10x16xf32>
    %12 = arith.maximumf %10, %11 : vector<10x10x16xf32>
    %13 = vector.shape_cast %12 : vector<10x10x16xf32> to vector<100x16xf32>
    %14 = arith.truncf %13 : vector<100x16xf32> to vector<100x16xbf16>
    %c0_8 = arith.constant 0 : index
    %c0_9 = arith.constant 0 : index
    %15 = vector.load %arg5[%c0_8, %c0_9] : memref<16x32xbf16, #tpu.memory_space<vmem>>, vector<16x32xbf16>
    %cst_10 = arith.constant dense<0.000000e+00> : vector<100x32xf32>
    %16 = tpu.matmul %14, %15, %cst_10 {dimension_numbers = #tpu.dot_dimension_numbers<[1], [0], [0], [1], [0, 0, 1, 1], [], []>} : vector<100x16xbf16>, vector<16x32xbf16>, vector<100x32xf32> -> vector<100x32xf32>
    %c0_11 = arith.constant 0 : index
    %c0_12 = arith.constant 0 : index
    %17 = vector.load %arg6[%c0_11, %c0_12] : memref<1x32xf32, #tpu.memory_space<vmem>>, vector<1x32xf32>
    %18 = vector.broadcast %17 : vector<1x32xf32> to vector<100x32xf32>
    %19 = arith.addf %16, %18 : vector<100x32xf32>
    %cst_13 = arith.constant 0.000000e+00 : f32
    %20 = vector.broadcast %cst_13 : f32 to vector<100x32xf32>
    %21 = arith.maximumf %19, %20 : vector<100x32xf32>
    %22 = vector.shape_cast %21 : vector<100x32xf32> to vector<10x10x32xf32>
    %23 = tpu.iota {dimensions = array<i32: 0>} : vector<10x10x32xi32>
    %24 = vector.broadcast %1 : i32 to vector<10x10x32xi32>
    %25 = arith.addi %24, %23 : vector<10x10x32xi32>
    %26 = tpu.iota {dimensions = array<i32: 1>} : vector<10x10x32xi32>
    %c1_i32 = arith.constant 1 : i32
    %27 = vector.broadcast %c1_i32 : i32 to vector<10x10x32xi32>
    %28 = arith.cmpi sge, %25, %27 : vector<10x10x32xi32>
    %c8_i32_14 = arith.constant 8 : i32
    %29 = vector.broadcast %c8_i32_14 : i32 to vector<10x10x32xi32>
    %30 = arith.cmpi sle, %25, %29 : vector<10x10x32xi32>
    %31 = arith.andi %28, %30 : vector<10x10x32xi1>
    %c1_i32_15 = arith.constant 1 : i32
    %32 = vector.broadcast %c1_i32_15 : i32 to vector<10x10x32xi32>
    %33 = arith.cmpi sge, %26, %32 : vector<10x10x32xi32>
    %34 = arith.andi %31, %33 : vector<10x10x32xi1>
    %c8_i32_16 = arith.constant 8 : i32
    %35 = vector.broadcast %c8_i32_16 : i32 to vector<10x10x32xi32>
    %36 = arith.cmpi sle, %26, %35 : vector<10x10x32xi32>
    %37 = arith.andi %34, %36 : vector<10x10x32xi1>
    %cst_17 = arith.constant 0.000000e+00 : f32
    %38 = vector.broadcast %cst_17 : f32 to vector<10x10x32xf32>
    %39 = arith.select %37, %22, %38 : vector<10x10x32xi1>, vector<10x10x32xf32>
    %cst_18 = arith.constant 0.000000e+00 : f32
    %40 = vector.broadcast %cst_18 : f32 to vector<64x8xf32>
    %41 = vector.extract_strided_slice %39 {offsets = [0, 0, 0], sizes = [8, 8, 32], strides = [1, 1, 1]} : vector<10x10x32xf32> to vector<8x8x32xf32>
    %42 = vector.shape_cast %41 : vector<8x8x32xf32> to vector<64x32xf32>
    %43 = arith.truncf %42 : vector<64x32xf32> to vector<64x32xbf16>
    %c0_19 = arith.constant 0 : index
    %c0_20 = arith.constant 0 : index
    %c0_21 = arith.constant 0 : index
    %44 = vector.load %arg7[%c0_19, %c0_20, %c0_21] : memref<9x32x8xbf16, #tpu.memory_space<vmem>>, vector<1x32x8xbf16>
    %45 = vector.shape_cast %44 : vector<1x32x8xbf16> to vector<32x8xbf16>
    %cst_22 = arith.constant dense<0.000000e+00> : vector<64x8xf32>
    %46 = tpu.matmul %43, %45, %cst_22 {dimension_numbers = #tpu.dot_dimension_numbers<[1], [0], [0], [1], [0, 0, 1, 1], [], []>} : vector<64x32xbf16>, vector<32x8xbf16>, vector<64x8xf32> -> vector<64x8xf32>
    %47 = arith.addf %40, %46 : vector<64x8xf32>
    %48 = vector.extract_strided_slice %39 {offsets = [0, 1, 0], sizes = [8, 8, 32], strides = [1, 1, 1]} : vector<10x10x32xf32> to vector<8x8x32xf32>
    %49 = vector.shape_cast %48 : vector<8x8x32xf32> to vector<64x32xf32>
    %50 = arith.truncf %49 : vector<64x32xf32> to vector<64x32xbf16>
    %c1 = arith.constant 1 : index
    %c0_23 = arith.constant 0 : index
    %c0_24 = arith.constant 0 : index
    %51 = vector.load %arg7[%c1, %c0_23, %c0_24] : memref<9x32x8xbf16, #tpu.memory_space<vmem>>, vector<1x32x8xbf16>
    %52 = vector.shape_cast %51 : vector<1x32x8xbf16> to vector<32x8xbf16>
    %cst_25 = arith.constant dense<0.000000e+00> : vector<64x8xf32>
    %53 = tpu.matmul %50, %52, %cst_25 {dimension_numbers = #tpu.dot_dimension_numbers<[1], [0], [0], [1], [0, 0, 1, 1], [], []>} : vector<64x32xbf16>, vector<32x8xbf16>, vector<64x8xf32> -> vector<64x8xf32>
    %54 = arith.addf %47, %53 : vector<64x8xf32>
    %55 = vector.extract_strided_slice %39 {offsets = [0, 2, 0], sizes = [8, 8, 32], strides = [1, 1, 1]} : vector<10x10x32xf32> to vector<8x8x32xf32>
    %56 = vector.shape_cast %55 : vector<8x8x32xf32> to vector<64x32xf32>
    %57 = arith.truncf %56 : vector<64x32xf32> to vector<64x32xbf16>
    %c2 = arith.constant 2 : index
    %c0_26 = arith.constant 0 : index
    %c0_27 = arith.constant 0 : index
    %58 = vector.load %arg7[%c2, %c0_26, %c0_27] : memref<9x32x8xbf16, #tpu.memory_space<vmem>>, vector<1x32x8xbf16>
    %59 = vector.shape_cast %58 : vector<1x32x8xbf16> to vector<32x8xbf16>
    %cst_28 = arith.constant dense<0.000000e+00> : vector<64x8xf32>
    %60 = tpu.matmul %57, %59, %cst_28 {dimension_numbers = #tpu.dot_dimension_numbers<[1], [0], [0], [1], [0, 0, 1, 1], [], []>} : vector<64x32xbf16>, vector<32x8xbf16>, vector<64x8xf32> -> vector<64x8xf32>
    %61 = arith.addf %54, %60 : vector<64x8xf32>
    %62 = vector.extract_strided_slice %39 {offsets = [1, 0, 0], sizes = [8, 8, 32], strides = [1, 1, 1]} : vector<10x10x32xf32> to vector<8x8x32xf32>
    %63 = vector.shape_cast %62 : vector<8x8x32xf32> to vector<64x32xf32>
    %64 = arith.truncf %63 : vector<64x32xf32> to vector<64x32xbf16>
    %c3 = arith.constant 3 : index
    %c0_29 = arith.constant 0 : index
    %c0_30 = arith.constant 0 : index
    %65 = vector.load %arg7[%c3, %c0_29, %c0_30] : memref<9x32x8xbf16, #tpu.memory_space<vmem>>, vector<1x32x8xbf16>
    %66 = vector.shape_cast %65 : vector<1x32x8xbf16> to vector<32x8xbf16>
    %cst_31 = arith.constant dense<0.000000e+00> : vector<64x8xf32>
    %67 = tpu.matmul %64, %66, %cst_31 {dimension_numbers = #tpu.dot_dimension_numbers<[1], [0], [0], [1], [0, 0, 1, 1], [], []>} : vector<64x32xbf16>, vector<32x8xbf16>, vector<64x8xf32> -> vector<64x8xf32>
    %68 = arith.addf %61, %67 : vector<64x8xf32>
    %69 = vector.extract_strided_slice %39 {offsets = [1, 1, 0], sizes = [8, 8, 32], strides = [1, 1, 1]} : vector<10x10x32xf32> to vector<8x8x32xf32>
    %70 = vector.shape_cast %69 : vector<8x8x32xf32> to vector<64x32xf32>
    %71 = arith.truncf %70 : vector<64x32xf32> to vector<64x32xbf16>
    %c4 = arith.constant 4 : index
    %c0_32 = arith.constant 0 : index
    %c0_33 = arith.constant 0 : index
    %72 = vector.load %arg7[%c4, %c0_32, %c0_33] : memref<9x32x8xbf16, #tpu.memory_space<vmem>>, vector<1x32x8xbf16>
    %73 = vector.shape_cast %72 : vector<1x32x8xbf16> to vector<32x8xbf16>
    %cst_34 = arith.constant dense<0.000000e+00> : vector<64x8xf32>
    %74 = tpu.matmul %71, %73, %cst_34 {dimension_numbers = #tpu.dot_dimension_numbers<[1], [0], [0], [1], [0, 0, 1, 1], [], []>} : vector<64x32xbf16>, vector<32x8xbf16>, vector<64x8xf32> -> vector<64x8xf32>
    %75 = arith.addf %68, %74 : vector<64x8xf32>
    %76 = vector.extract_strided_slice %39 {offsets = [1, 2, 0], sizes = [8, 8, 32], strides = [1, 1, 1]} : vector<10x10x32xf32> to vector<8x8x32xf32>
    %77 = vector.shape_cast %76 : vector<8x8x32xf32> to vector<64x32xf32>
    %78 = arith.truncf %77 : vector<64x32xf32> to vector<64x32xbf16>
    %c5 = arith.constant 5 : index
    %c0_35 = arith.constant 0 : index
    %c0_36 = arith.constant 0 : index
    %79 = vector.load %arg7[%c5, %c0_35, %c0_36] : memref<9x32x8xbf16, #tpu.memory_space<vmem>>, vector<1x32x8xbf16>
    %80 = vector.shape_cast %79 : vector<1x32x8xbf16> to vector<32x8xbf16>
    %cst_37 = arith.constant dense<0.000000e+00> : vector<64x8xf32>
    %81 = tpu.matmul %78, %80, %cst_37 {dimension_numbers = #tpu.dot_dimension_numbers<[1], [0], [0], [1], [0, 0, 1, 1], [], []>} : vector<64x32xbf16>, vector<32x8xbf16>, vector<64x8xf32> -> vector<64x8xf32>
    %82 = arith.addf %75, %81 : vector<64x8xf32>
    %83 = vector.extract_strided_slice %39 {offsets = [2, 0, 0], sizes = [8, 8, 32], strides = [1, 1, 1]} : vector<10x10x32xf32> to vector<8x8x32xf32>
    %84 = vector.shape_cast %83 : vector<8x8x32xf32> to vector<64x32xf32>
    %85 = arith.truncf %84 : vector<64x32xf32> to vector<64x32xbf16>
    %c6 = arith.constant 6 : index
    %c0_38 = arith.constant 0 : index
    %c0_39 = arith.constant 0 : index
    %86 = vector.load %arg7[%c6, %c0_38, %c0_39] : memref<9x32x8xbf16, #tpu.memory_space<vmem>>, vector<1x32x8xbf16>
    %87 = vector.shape_cast %86 : vector<1x32x8xbf16> to vector<32x8xbf16>
    %cst_40 = arith.constant dense<0.000000e+00> : vector<64x8xf32>
    %88 = tpu.matmul %85, %87, %cst_40 {dimension_numbers = #tpu.dot_dimension_numbers<[1], [0], [0], [1], [0, 0, 1, 1], [], []>} : vector<64x32xbf16>, vector<32x8xbf16>, vector<64x8xf32> -> vector<64x8xf32>
    %89 = arith.addf %82, %88 : vector<64x8xf32>
    %90 = vector.extract_strided_slice %39 {offsets = [2, 1, 0], sizes = [8, 8, 32], strides = [1, 1, 1]} : vector<10x10x32xf32> to vector<8x8x32xf32>
    %91 = vector.shape_cast %90 : vector<8x8x32xf32> to vector<64x32xf32>
    %92 = arith.truncf %91 : vector<64x32xf32> to vector<64x32xbf16>
    %c7 = arith.constant 7 : index
    %c0_41 = arith.constant 0 : index
    %c0_42 = arith.constant 0 : index
    %93 = vector.load %arg7[%c7, %c0_41, %c0_42] : memref<9x32x8xbf16, #tpu.memory_space<vmem>>, vector<1x32x8xbf16>
    %94 = vector.shape_cast %93 : vector<1x32x8xbf16> to vector<32x8xbf16>
    %cst_43 = arith.constant dense<0.000000e+00> : vector<64x8xf32>
    %95 = tpu.matmul %92, %94, %cst_43 {dimension_numbers = #tpu.dot_dimension_numbers<[1], [0], [0], [1], [0, 0, 1, 1], [], []>} : vector<64x32xbf16>, vector<32x8xbf16>, vector<64x8xf32> -> vector<64x8xf32>
    %96 = arith.addf %89, %95 : vector<64x8xf32>
    %97 = vector.extract_strided_slice %39 {offsets = [2, 2, 0], sizes = [8, 8, 32], strides = [1, 1, 1]} : vector<10x10x32xf32> to vector<8x8x32xf32>
    %98 = vector.shape_cast %97 : vector<8x8x32xf32> to vector<64x32xf32>
    %99 = arith.truncf %98 : vector<64x32xf32> to vector<64x32xbf16>
    %c8 = arith.constant 8 : index
    %c0_44 = arith.constant 0 : index
    %c0_45 = arith.constant 0 : index
    %100 = vector.load %arg7[%c8, %c0_44, %c0_45] : memref<9x32x8xbf16, #tpu.memory_space<vmem>>, vector<1x32x8xbf16>
    %101 = vector.shape_cast %100 : vector<1x32x8xbf16> to vector<32x8xbf16>
    %cst_46 = arith.constant dense<0.000000e+00> : vector<64x8xf32>
    %102 = tpu.matmul %99, %101, %cst_46 {dimension_numbers = #tpu.dot_dimension_numbers<[1], [0], [0], [1], [0, 0, 1, 1], [], []>} : vector<64x32xbf16>, vector<32x8xbf16>, vector<64x8xf32> -> vector<64x8xf32>
    %103 = arith.addf %96, %102 : vector<64x8xf32>
    %c0_47 = arith.constant 0 : index
    %c0_48 = arith.constant 0 : index
    %104 = vector.load %arg8[%c0_47, %c0_48] : memref<1x8xf32, #tpu.memory_space<vmem>>, vector<1x8xf32>
    %105 = vector.broadcast %104 : vector<1x8xf32> to vector<64x8xf32>
    %106 = arith.addf %103, %105 : vector<64x8xf32>
    %cst_49 = arith.constant 0.000000e+00 : f32
    %107 = vector.broadcast %cst_49 : f32 to vector<64x8xf32>
    %108 = arith.maximumf %106, %107 : vector<64x8xf32>
    %109 = arith.truncf %108 : vector<64x8xf32> to vector<64x8xbf16>
    %c0_50 = arith.constant 0 : index
    %c0_51 = arith.constant 0 : index
    %110 = vector.load %arg9[%c0_50, %c0_51] : memref<8x8xbf16, #tpu.memory_space<vmem>>, vector<8x8xbf16>
    %cst_52 = arith.constant dense<0.000000e+00> : vector<64x8xf32>
    %111 = tpu.matmul %109, %110, %cst_52 {dimension_numbers = #tpu.dot_dimension_numbers<[1], [0], [0], [1], [0, 0, 1, 1], [], []>} : vector<64x8xbf16>, vector<8x8xbf16>, vector<64x8xf32> -> vector<64x8xf32>
    %112 = vector.extract_strided_slice %4 {offsets = [0, 0, 0], sizes = [8, 8, 16], strides = [1, 1, 1]} : vector<10x10x16xf32> to vector<8x8x16xf32>
    %113 = vector.shape_cast %112 : vector<8x8x16xf32> to vector<64x16xf32>
    %114 = arith.truncf %113 : vector<64x16xf32> to vector<64x16xbf16>
    %c0_53 = arith.constant 0 : index
    %c0_54 = arith.constant 0 : index
    %c0_55 = arith.constant 0 : index
    %115 = vector.load %arg10[%c0_53, %c0_54, %c0_55] : memref<9x16x8xbf16, #tpu.memory_space<vmem>>, vector<1x16x8xbf16>
    %116 = vector.shape_cast %115 : vector<1x16x8xbf16> to vector<16x8xbf16>
    %cst_56 = arith.constant dense<0.000000e+00> : vector<64x8xf32>
    %117 = tpu.matmul %114, %116, %cst_56 {dimension_numbers = #tpu.dot_dimension_numbers<[1], [0], [0], [1], [0, 0, 1, 1], [], []>} : vector<64x16xbf16>, vector<16x8xbf16>, vector<64x8xf32> -> vector<64x8xf32>
    %118 = arith.addf %111, %117 : vector<64x8xf32>
    %119 = vector.extract_strided_slice %4 {offsets = [0, 1, 0], sizes = [8, 8, 16], strides = [1, 1, 1]} : vector<10x10x16xf32> to vector<8x8x16xf32>
    %120 = vector.shape_cast %119 : vector<8x8x16xf32> to vector<64x16xf32>
    %121 = arith.truncf %120 : vector<64x16xf32> to vector<64x16xbf16>
    %c1_57 = arith.constant 1 : index
    %c0_58 = arith.constant 0 : index
    %c0_59 = arith.constant 0 : index
    %122 = vector.load %arg10[%c1_57, %c0_58, %c0_59] : memref<9x16x8xbf16, #tpu.memory_space<vmem>>, vector<1x16x8xbf16>
    %123 = vector.shape_cast %122 : vector<1x16x8xbf16> to vector<16x8xbf16>
    %cst_60 = arith.constant dense<0.000000e+00> : vector<64x8xf32>
    %124 = tpu.matmul %121, %123, %cst_60 {dimension_numbers = #tpu.dot_dimension_numbers<[1], [0], [0], [1], [0, 0, 1, 1], [], []>} : vector<64x16xbf16>, vector<16x8xbf16>, vector<64x8xf32> -> vector<64x8xf32>
    %125 = arith.addf %118, %124 : vector<64x8xf32>
    %126 = vector.extract_strided_slice %4 {offsets = [0, 2, 0], sizes = [8, 8, 16], strides = [1, 1, 1]} : vector<10x10x16xf32> to vector<8x8x16xf32>
    %127 = vector.shape_cast %126 : vector<8x8x16xf32> to vector<64x16xf32>
    %128 = arith.truncf %127 : vector<64x16xf32> to vector<64x16xbf16>
    %c2_61 = arith.constant 2 : index
    %c0_62 = arith.constant 0 : index
    %c0_63 = arith.constant 0 : index
    %129 = vector.load %arg10[%c2_61, %c0_62, %c0_63] : memref<9x16x8xbf16, #tpu.memory_space<vmem>>, vector<1x16x8xbf16>
    %130 = vector.shape_cast %129 : vector<1x16x8xbf16> to vector<16x8xbf16>
    %cst_64 = arith.constant dense<0.000000e+00> : vector<64x8xf32>
    %131 = tpu.matmul %128, %130, %cst_64 {dimension_numbers = #tpu.dot_dimension_numbers<[1], [0], [0], [1], [0, 0, 1, 1], [], []>} : vector<64x16xbf16>, vector<16x8xbf16>, vector<64x8xf32> -> vector<64x8xf32>
    %132 = arith.addf %125, %131 : vector<64x8xf32>
    %133 = vector.extract_strided_slice %4 {offsets = [1, 0, 0], sizes = [8, 8, 16], strides = [1, 1, 1]} : vector<10x10x16xf32> to vector<8x8x16xf32>
    %134 = vector.shape_cast %133 : vector<8x8x16xf32> to vector<64x16xf32>
    %135 = arith.truncf %134 : vector<64x16xf32> to vector<64x16xbf16>
    %c3_65 = arith.constant 3 : index
    %c0_66 = arith.constant 0 : index
    %c0_67 = arith.constant 0 : index
    %136 = vector.load %arg10[%c3_65, %c0_66, %c0_67] : memref<9x16x8xbf16, #tpu.memory_space<vmem>>, vector<1x16x8xbf16>
    %137 = vector.shape_cast %136 : vector<1x16x8xbf16> to vector<16x8xbf16>
    %cst_68 = arith.constant dense<0.000000e+00> : vector<64x8xf32>
    %138 = tpu.matmul %135, %137, %cst_68 {dimension_numbers = #tpu.dot_dimension_numbers<[1], [0], [0], [1], [0, 0, 1, 1], [], []>} : vector<64x16xbf16>, vector<16x8xbf16>, vector<64x8xf32> -> vector<64x8xf32>
    %139 = arith.addf %132, %138 : vector<64x8xf32>
    %140 = vector.extract_strided_slice %4 {offsets = [1, 1, 0], sizes = [8, 8, 16], strides = [1, 1, 1]} : vector<10x10x16xf32> to vector<8x8x16xf32>
    %141 = vector.shape_cast %140 : vector<8x8x16xf32> to vector<64x16xf32>
    %142 = arith.truncf %141 : vector<64x16xf32> to vector<64x16xbf16>
    %c4_69 = arith.constant 4 : index
    %c0_70 = arith.constant 0 : index
    %c0_71 = arith.constant 0 : index
    %143 = vector.load %arg10[%c4_69, %c0_70, %c0_71] : memref<9x16x8xbf16, #tpu.memory_space<vmem>>, vector<1x16x8xbf16>
    %144 = vector.shape_cast %143 : vector<1x16x8xbf16> to vector<16x8xbf16>
    %cst_72 = arith.constant dense<0.000000e+00> : vector<64x8xf32>
    %145 = tpu.matmul %142, %144, %cst_72 {dimension_numbers = #tpu.dot_dimension_numbers<[1], [0], [0], [1], [0, 0, 1, 1], [], []>} : vector<64x16xbf16>, vector<16x8xbf16>, vector<64x8xf32> -> vector<64x8xf32>
    %146 = arith.addf %139, %145 : vector<64x8xf32>
    %147 = vector.extract_strided_slice %4 {offsets = [1, 2, 0], sizes = [8, 8, 16], strides = [1, 1, 1]} : vector<10x10x16xf32> to vector<8x8x16xf32>
    %148 = vector.shape_cast %147 : vector<8x8x16xf32> to vector<64x16xf32>
    %149 = arith.truncf %148 : vector<64x16xf32> to vector<64x16xbf16>
    %c5_73 = arith.constant 5 : index
    %c0_74 = arith.constant 0 : index
    %c0_75 = arith.constant 0 : index
    %150 = vector.load %arg10[%c5_73, %c0_74, %c0_75] : memref<9x16x8xbf16, #tpu.memory_space<vmem>>, vector<1x16x8xbf16>
    %151 = vector.shape_cast %150 : vector<1x16x8xbf16> to vector<16x8xbf16>
    %cst_76 = arith.constant dense<0.000000e+00> : vector<64x8xf32>
    %152 = tpu.matmul %149, %151, %cst_76 {dimension_numbers = #tpu.dot_dimension_numbers<[1], [0], [0], [1], [0, 0, 1, 1], [], []>} : vector<64x16xbf16>, vector<16x8xbf16>, vector<64x8xf32> -> vector<64x8xf32>
    %153 = arith.addf %146, %152 : vector<64x8xf32>
    %154 = vector.extract_strided_slice %4 {offsets = [2, 0, 0], sizes = [8, 8, 16], strides = [1, 1, 1]} : vector<10x10x16xf32> to vector<8x8x16xf32>
    %155 = vector.shape_cast %154 : vector<8x8x16xf32> to vector<64x16xf32>
    %156 = arith.truncf %155 : vector<64x16xf32> to vector<64x16xbf16>
    %c6_77 = arith.constant 6 : index
    %c0_78 = arith.constant 0 : index
    %c0_79 = arith.constant 0 : index
    %157 = vector.load %arg10[%c6_77, %c0_78, %c0_79] : memref<9x16x8xbf16, #tpu.memory_space<vmem>>, vector<1x16x8xbf16>
    %158 = vector.shape_cast %157 : vector<1x16x8xbf16> to vector<16x8xbf16>
    %cst_80 = arith.constant dense<0.000000e+00> : vector<64x8xf32>
    %159 = tpu.matmul %156, %158, %cst_80 {dimension_numbers = #tpu.dot_dimension_numbers<[1], [0], [0], [1], [0, 0, 1, 1], [], []>} : vector<64x16xbf16>, vector<16x8xbf16>, vector<64x8xf32> -> vector<64x8xf32>
    %160 = arith.addf %153, %159 : vector<64x8xf32>
    %161 = vector.extract_strided_slice %4 {offsets = [2, 1, 0], sizes = [8, 8, 16], strides = [1, 1, 1]} : vector<10x10x16xf32> to vector<8x8x16xf32>
    %162 = vector.shape_cast %161 : vector<8x8x16xf32> to vector<64x16xf32>
    %163 = arith.truncf %162 : vector<64x16xf32> to vector<64x16xbf16>
    %c7_81 = arith.constant 7 : index
    %c0_82 = arith.constant 0 : index
    %c0_83 = arith.constant 0 : index
    %164 = vector.load %arg10[%c7_81, %c0_82, %c0_83] : memref<9x16x8xbf16, #tpu.memory_space<vmem>>, vector<1x16x8xbf16>
    %165 = vector.shape_cast %164 : vector<1x16x8xbf16> to vector<16x8xbf16>
    %cst_84 = arith.constant dense<0.000000e+00> : vector<64x8xf32>
    %166 = tpu.matmul %163, %165, %cst_84 {dimension_numbers = #tpu.dot_dimension_numbers<[1], [0], [0], [1], [0, 0, 1, 1], [], []>} : vector<64x16xbf16>, vector<16x8xbf16>, vector<64x8xf32> -> vector<64x8xf32>
    %167 = arith.addf %160, %166 : vector<64x8xf32>
    %168 = vector.extract_strided_slice %4 {offsets = [2, 2, 0], sizes = [8, 8, 16], strides = [1, 1, 1]} : vector<10x10x16xf32> to vector<8x8x16xf32>
    %169 = vector.shape_cast %168 : vector<8x8x16xf32> to vector<64x16xf32>
    %170 = arith.truncf %169 : vector<64x16xf32> to vector<64x16xbf16>
    %c8_85 = arith.constant 8 : index
    %c0_86 = arith.constant 0 : index
    %c0_87 = arith.constant 0 : index
    %171 = vector.load %arg10[%c8_85, %c0_86, %c0_87] : memref<9x16x8xbf16, #tpu.memory_space<vmem>>, vector<1x16x8xbf16>
    %172 = vector.shape_cast %171 : vector<1x16x8xbf16> to vector<16x8xbf16>
    %cst_88 = arith.constant dense<0.000000e+00> : vector<64x8xf32>
    %173 = tpu.matmul %170, %172, %cst_88 {dimension_numbers = #tpu.dot_dimension_numbers<[1], [0], [0], [1], [0, 0, 1, 1], [], []>} : vector<64x16xbf16>, vector<16x8xbf16>, vector<64x8xf32> -> vector<64x8xf32>
    %174 = arith.addf %167, %173 : vector<64x8xf32>
    %175 = vector.shape_cast %174 : vector<64x8xf32> to vector<8x8x8xf32>
    %c0_89 = arith.constant 0 : index
    %c0_90 = arith.constant 0 : index
    %c0_91 = arith.constant 0 : index
    %c0_92 = arith.constant 0 : index
    %176 = vector.load %arg11[%c0_89, %c0_90, %c0_91, %c0_92] : memref<1x8x8x8xf32, #tpu.memory_space<vmem>>, vector<1x8x8x8xf32>
    %177 = vector.shape_cast %176 : vector<1x8x8x8xf32> to vector<8x8x8xf32>
    %178 = vector.shape_cast %175 : vector<8x8x8xf32> to vector<1x8x8x8xf32>
    tpu.vector_store %arg11[%c0_89, %c0_90, %c0_91, %c0_92], %178 {strides = array<i32>} : memref<1x8x8x8xf32, #tpu.memory_space<vmem>>, vector<1x8x8x8xf32>,
    return
  }
  func.func @transform_0(%arg0: i32, %arg1: i32) -> (i32, i32, i32, i32) {
    %c0_i32 = arith.constant 0 : i32
    %c0_i32_0 = arith.constant 0 : i32
    %c0_i32_1 = arith.constant 0 : i32
    %c0_i32_2 = arith.constant 0 : i32
    return %arg0, %c0_i32, %c0_i32_0, %c0_i32_1 : i32, i32, i32, i32
  }
  func.func @transform_1(%arg0: i32, %arg1: i32) -> (i32, i32, i32) {
    %c0_i32 = arith.constant 0 : i32
    %c0_i32_0 = arith.constant 0 : i32
    %c0_i32_1 = arith.constant 0 : i32
    %c0_i32_2 = arith.constant 0 : i32
    return %c0_i32, %c0_i32_0, %c0_i32_1 : i32, i32, i32
  }
  func.func @transform_2(%arg0: i32, %arg1: i32) -> (i32, i32, i32) {
    %c0_i32 = arith.constant 0 : i32
    %c0_i32_0 = arith.constant 0 : i32
    %c0_i32_1 = arith.constant 0 : i32
    %c0_i32_2 = arith.constant 0 : i32
    return %c0_i32, %c0_i32_0, %c0_i32_1 : i32, i32, i32
  }
  func.func @transform_3(%arg0: i32, %arg1: i32) -> (i32, i32) {
    %c0_i32 = arith.constant 0 : i32
    %c0_i32_0 = arith.constant 0 : i32
    %c0_i32_1 = arith.constant 0 : i32
    return %c0_i32, %c0_i32_0 : i32, i32
  }
  func.func @transform_4(%arg0: i32, %arg1: i32) -> (i32, i32) {
    %c0_i32 = arith.constant 0 : i32
    %c0_i32_0 = arith.constant 0 : i32
    %c0_i32_1 = arith.constant 0 : i32
    return %c0_i32, %c0_i32_0 : i32, i32
  }
  func.func @transform_5(%arg0: i32, %arg1: i32) -> (i32, i32, i32) {
    %c0_i32 = arith.constant 0 : i32
    %c0_i32_0 = arith.constant 0 : i32
    %c0_i32_1 = arith.constant 0 : i32
    %c0_i32_2 = arith.constant 0 : i32
    return %c0_i32, %c0_i32_0, %c0_i32_1 : i32, i32, i32
  }
  func.func @transform_6(%arg0: i32, %arg1: i32) -> (i32, i32) {
    %c0_i32 = arith.constant 0 : i32
    %c0_i32_0 = arith.constant 0 : i32
    %c0_i32_1 = arith.constant 0 : i32
    return %c0_i32, %c0_i32_0 : i32, i32
  }
  func.func @transform_7(%arg0: i32, %arg1: i32) -> (i32, i32) {
    %c0_i32 = arith.constant 0 : i32
    %c0_i32_0 = arith.constant 0 : i32
    %c0_i32_1 = arith.constant 0 : i32
    return %c0_i32, %c0_i32_0 : i32, i32
  }
  func.func @transform_8(%arg0: i32, %arg1: i32) -> (i32, i32, i32) {
    %c0_i32 = arith.constant 0 : i32
    %c0_i32_0 = arith.constant 0 : i32
    %c0_i32_1 = arith.constant 0 : i32
    %c0_i32_2 = arith.constant 0 : i32
    return %c0_i32, %c0_i32_0, %c0_i32_1 : i32, i32, i32
  }
  func.func @transform_9(%arg0: i32, %arg1: i32) -> (i32, i32, i32, i32) {
    %c0_i32 = arith.constant 0 : i32
    %c0_i32_0 = arith.constant 0 : i32
    %c0_i32_1 = arith.constant 0 : i32
    return %arg0, %arg1, %c0_i32, %c0_i32_0 : i32, i32, i32, i32
  }
}

</mosaic_0001>

<bundles_post_ra>
// kernel: tpu_custom_call.1
= control target key start
LH: loop header
LB: loop body
LE: loop exit
PB: predicated region body
PF: predicated region fallthrough
CT: control target
= control target key end

     0   :  { %14 = vsyncpa [#allocation3], 0  ;;  %s5697_s0 = inlined_call_operand.vmem [shape: f32[2,10,10,16], index: 0, kind: input, shape index: {}]   ;;  %s5698_s1 = inlined_call_operand.vmem [shape: f32[1,1,16], index: 1, kind: input, shape index: {}]   ;;  %s5699_s2 = inlined_call_operand.vmem [shape: f32[1,1,16], index: 2, kind: input, shape index: {}]   ;;  %s5700_s3 = inlined_call_operand.vmem [shape: bf16[16,32], index: 3, kind: input, shape index: {}]   ;;  %s5701_s4 = inlined_call_operand.vmem [shape: f32[1,32], index: 4, kind: input, shape index: {}]   ;;  %s5702_s5 = inlined_call_operand.vmem [shape: bf16[9,32,8], index: 5, kind: input, shape index: {}]   ;;  %s5703_s6 = inlined_call_operand.vmem [shape: f32[1,8], index: 6, kind: input, shape index: {}]   ;;  %s5704_s7 = inlined_call_operand.vmem [shape: bf16[8,8], index: 7, kind: input, shape index: {}]   ;;  %s5705_s8 = inlined_call_operand.vmem [shape: bf16[9,16,8], index: 8, kind: input, shape index: {}]   ;;  %s5706_s9 = inlined_call_operand.hbm [shape: f32[2,8,8,8], index: 9, kind: output, shape index: {}]  }
   0x1   :  { %16 = vsyncpa [#allocation3 + $0x1], 0  ;;  %s4726_s30 = smov 0   ;;  %s4728_s10 = smov 0  }
   0x2   :  { %s4730_s11 = smov 0   ;;  %s4732_s12 = smov 0  }
   0x3   :  { %s4734_s13 = smov 0   ;;  %s4736_s14 = smov 0  }
   0x4 LB: > { %s3816_s15 = sadd.s32 4294967295, %s4668_s14   ;;  %s3817_s16 = sadd.s32 4294967294, %s4668_s14   ;;  %s4668_s14 = sphi %s4736_s14, %s22_s14   ;;  %s4664_s13 = sphi %s4734_s13, %s5713_s13   ;;  %s4660_s12 = sphi %s4732_s12, %s5712_s12   ;;  %s4656_s11 = sphi %s4730_s11, %s5711_s11   ;;  %s4652_s10 = sphi %s4728_s10, %s5710_s10   ;;  %s4648_s30 = sphi %s4726_s30, %s5709_s30  }
   0x5   : > { %s34_s17 = sadd.s32 1, %s4664_s13  ;;  %s237_s18 = sadd.s32 1, %s4656_s11 }
   0x6   : > { %p36_p0 = scmp.ge.s32.totalorder %s34_s17, 2  ;;  %p247_p1 = scmp.ne.s32.totalorder %s4656_s11, %s4652_s10 }
   0x7   : > { %p248_p2 = scmp.eq.s32.totalorder %s3816_s15, 1  ;;  %p253_p3 = scmp.ne.s32.totalorder %s4652_s10, %s4648_s30 }
   0x8   : > { %s5715_s17 = smov (%p36_p0, %s34_s17), 0  ;;  %p254_p5 = scmp.eq.s32.totalorder %s3817_s16, 1 }
   0x9   : > { %p4766_p4 = por %p248_p2, %p247_p1  ;;  %s232_s20 = ssub.s32 %s4664_s13, %s5715_s17 }
   0xa   : > { %p3820_p6 = scmp.ge.s32.totalorder %s4668_s14, 1  ;;  %p235_p7 = scmp.eq.s32.totalorder %s232_s20, 0 }
   0xb   : > { %p4773_p8 = por %p254_p5, %p253_p3  ;;  %p304_p9 = scmp.lt.s32.totalorder %s4668_s14, 3 }
   0xc   : > { %s4779_s22 = scalar_select %p235_p7, %s4656_s11, %s237_s18  }
   0xd   : > { %p305_p10 = pnand %p3820_p6, %p304_p9 }
   0xe   : > { %v4542_v0 = vld [vmem:[%s5700_s3] sm:$0xff] (!%p305_p10)   ;;  %v4670_v1 = vmov (!%p305_p10), 0.0   ;;  %p340_p11 = scmp.lt.s32.totalorder (!%p305_p10), %s4660_s12, 1  ;;  %v468_v2 = vlaneseq (!%p305_p10)  ;;  %vm4671_vm0 = vmmov (!%p305_p10), 0   ;;  %v4672_v3 = vmov (!%p305_p10), 1983009808  }
   0xf   : > { %308 = sbr.rel (%p305_p10) target bundleno = 1026 (0x402), region = 56  ;;  %4104 = vmatprep.subr.bf16.mxu0 (!%p305_p10), %v4670_v1  ;;  %4342 = vmatprep.subr.bf16.mxu1 (!%p305_p10), %v4670_v1  ;;  %v466_v4 = vunpack.c.l.s4 (!%p305_p10), %v4672_v3  ;;  %v4795_v5 = vld [vmem:[%s5698_s1] ss:$0 sm:$0xff] (!%p305_p10)  ;;  %vm951_vm1 = vcmask (!%p305_p10), 130048   ;;  %vm1690_vm4 = vcmask (!%p305_p10), 1046528   ;;  %vm1911_vm5 = vcmask (!%p305_p10), 1045504  }
  0x10   : > { %4105 = vmatpush3.bf16.msra.mxu0 (!%p305_p10), %v4542_v0  ;;  %4343 = vmatpush3.bf16.msra.mxu1 (!%p305_p10), %v4542_v0  ;;  %v4797_v6 = vshrl.u32 (!%p305_p10), %v468_v2, 7  ;;  %v4802_v7 = vld [vmem:[%s5699_s2] ss:$0 sm:$0xff] (!%p305_p10)  ;;  %vm1744_vm6 = vcmask (!%p305_p10), 261120   ;;  %vm2800_vm7 = vcmask (!%p305_p10), 1043456   ;;  %vm2787_vm8 = vcmask (!%p305_p10), 64512  }
  0x11   : > { %4106 = vmatprep.mubr.msk.bf16.mxu0 (!%p305_p10), %vm4671_vm0, %v4670_v1  ;;  %4118 = vmatprep.mubr.msk.bf16.mxu1 (!%p305_p10), %vm4671_vm0, %v4670_v1  ;;  %v467_v8 = vunpack.c.0.s8 (!%p305_p10), %v466_v4  ;;  %s4673_s16 = smov (!%p305_p10), [#allocation2]  }
  0x12   : > { %vm1342_vm3 = vcmp.ge.s32.totalorder (!%p305_p10), %v4797_v6, 1  ;;  %s4594_s18 = sshll.u32 (!%p305_p10), %s4673_s16, 4  ;;  %s4595_s18 = int_to_ptr.vmem [resolvable:$false] %s4594_s18 }
  0x13   : > { %v4819_v18 = vsub.s32 (!%p305_p10), %v467_v8, %v4797_v6 }
  0x16   : > { %s341_s25 = scalar_select %p340_p11, %s4660_s12, 1 }
  0x18   : > { %s4481_s28 = smul.u32 160, %s341_s25  ;;  %s3991_s25 = sshll.u32 %s4660_s12, 10 }
  0x19   : > { %s5644_s29 = scalar_lea.hbm %s5706_s9, %s3991_s25 }
  0x1a   : > { %s4807_s20 = scalar_lea.vmem %s5697_s0, %s4481_s28 }
  0x1b   : > { %v350_v9 = vld [vmem:[%s4807_s20] sm:$0xff]  ;;  %v351_v10 = vld [vmem:[%s4807_s20 + $0x8] sm:$0x3]  ;;  %v352_v11 = vld [vmem:[%s4807_s20 + $0x10] sm:$0xff] }
  0x1c   : > { %v377_v12 = vmul.f32 %v4795_v5, %v350_v9  ;;  %v378_v13 = vmul.f32 %v4795_v5, %v351_v10  ;;  %v379_v14 = vmul.f32 %v4795_v5, %v352_v11  ;;  %v359_v15 = vld [vmem:[%s4807_s20 + $0x48] sm:$0x3]  ;;  %v360_v16 = vld [vmem:[%s4807_s20 + $0x50] sm:$0xff]  ;;  %v361_v17 = vld [vmem:[%s4807_s20 + $0x58] sm:$0x3] }
  0x1d   : > { %v362_v19 = vld [vmem:[%s4807_s20 + $0x60] sm:$0xff]  ;;  %v386_v20 = vmul.f32 %v4795_v5, %v359_v15  ;;  %v387_v21 = vmul.f32 %v4795_v5, %v360_v16  ;;  %v388_v22 = vmul.f32 %v4795_v5, %v361_v17  ;;  %v353_v23 = vld [vmem:[%s4807_s20 + $0x18] sm:$0x3]  ;;  %v355_v53 = vld [vmem:[%s4807_s20 + $0x28] sm:$0x3] }
  0x1e   : > { %v404_v24 = vadd.f32 %v4802_v7, %v377_v12  ;;  %v405_v25 = vadd.f32 %v4802_v7, %v378_v13  ;;  %v406_v26 = vadd.f32 %v4802_v7, %v379_v14  ;;  %v389_v27 = vmul.f32 %v4795_v5, %v362_v19  ;;  %v4831_v28 = vld [vmem:[%s4807_s20 + $0x20] sm:$0xff]  ;;  %v4853_v58 = vld [vmem:[%s4807_s20 + $0x30] sm:$0xff]  ;;  %v363_v15 = vld [vmem:[%s4807_s20 + $0x68] sm:$0x3] }
  0x1f   : > { %v413_v29 = vadd.f32 %v4802_v7, %v386_v20  ;;  %v414_v30 = vadd.f32 %v4802_v7, %v387_v21  ;;  %v415_v31 = vadd.f32 %v4802_v7, %v388_v22  ;;  %v380_v32 = vmul.f32 %v4795_v5, %v353_v23 }
  0x20   : > { %v424_v33 = vmax.f32 %v404_v24, 0.0  ;;  %v425_v34 = vmax.f32 %v405_v25, 0.0  ;;  %v426_v35 = vmax.f32 %v406_v26, 0.0  ;;  %v416_v36 = vadd.f32 %v4802_v7, %v389_v27  ;;  %v364_v25 = vld [vmem:[%s4807_s20 + $0x70] sm:$0xff]  ;;  %v365_v26 = vld [vmem:[%s4807_s20 + $0x78] sm:$0x3] }
  0x21   : > { %v433_v37 = vmax.f32 %v413_v29, 0.0  ;;  %v434_v38 = vmax.f32 %v414_v30, 0.0  ;;  %v435_v39 = vmax.f32 %v415_v31, 0.0  ;;  %v381_v40 = vmul.f32 %v4795_v5, %v4831_v28 }
  0x22   : > { %v464_v41 = vcombine.high %v424_v33, %v424_v33  ;;  %v471_v42 = vrot.slane %v424_v33, %v4819_v18  ;;  %v487_v43 = vrot.slane %v425_v34, %v4819_v18  ;;  %v488_v44 = vcombine.high %v426_v35, %v426_v35 }
  0x23   : > { %v495_v45 = vrot.slane %v426_v35, %v4819_v18  ;;  %v4843_v46 = vmax.f32 %v416_v36, 0.0  ;;  %v583_v47 = vrot.slane %v433_v37, %v4819_v18  ;;  %v584_v48 = vcombine.high %v434_v38, %v434_v38 }
  0x24   : > { %v478_v49 = vrot.slane %v464_v41, %v4819_v18  ;;  %v479_v50 = vcombine.high %v471_v42, %v471_v42  ;;  %v502_v51 = vrot.slane %v488_v44, %v4819_v18  ;;  %v591_v52 = vrot.slane %v434_v38, %v4819_v18 }
  0x25   : > { %v503_v54 = vcombine.high %v495_v45, %v495_v45  ;;  %v721_v55 = vcombine.low %v487_v43, %v495_v45  ;;  %v598_v56 = vrot.slane %v584_v48, %v4819_v18  ;;  %v607_v57 = vrot.slane %v435_v39, %v4819_v18 }
  0x26   : > { %v480_v59 = vcombine.high %v478_v49, %v478_v49  ;;  %v704_v60 = vcombine.low %v471_v42, %v479_v50  ;;  %v599_v61 = vcombine.high %v591_v52, %v591_v52  ;;  %v615_v62 = vrot.slane %v4843_v46, %v4819_v18 }
  0x27   : > { %v722_v63 = vcombine.low %v503_v54, %v502_v51  ;;  %v729_v0 = vrot.slane %v721_v55, %v4819_v18  ;;  %v600_v2 = vcombine.high %v598_v56, %v598_v56  ;;  %v806_v3 = vcombine.low %v583_v47, %v591_v52 }
  0x28   : > { %v705_v4 = vcombine.low %v478_v49, %v480_v59  ;;  %v712_v8 = vrot.slane %v704_v60, %v4819_v18  ;;  %v623_v9 = vcombine.high %v615_v62, %v615_v62  ;;  %v807_v10 = vcombine.low %v599_v61, %v598_v56 }
  0x29   : > { %v736_v11 = vrot.slane %v722_v63, %v4819_v18  ;;  %v814_v12 = vrot.slane %v806_v3, %v4819_v18  ;;  %v823_v13 = vcombine.low %v600_v2, %v607_v57  ;;  %v382_v14 = vmul.f32 %v4795_v5, %v355_v53  ;;  %v357_v57 = vld [vmem:[%s4807_s20 + $0x38] sm:$0x3] }
  0x2a   : > { %v719_v16 = vrot.slane %v705_v4, %v4819_v18  ;;  %v821_v17 = vrot.slane %v807_v10, %v4819_v18  ;;  %v824_v19 = vcombine.low %v615_v62, %v623_v9  ;;  %v383_v20 = vmul.f32 %v4795_v5, %v4853_v58  ;;  %v4898_v4 = vld [vmem:[%s4807_s20 + $0x40] sm:$0xff] }
  0x2b   : > { %v737_v21 = vcombine.low %v729_v0, %v736_v11  ;;  %v831_v22 = vrot.slane %v823_v13, %v4819_v18  ;;  %v407_v23 = vadd.f32 %v4802_v7, %v380_v32  ;;  %v408_v24 = vadd.f32 %v4802_v7, %v381_v40 }
  0x2c   : > { %v720_v27 = vcombine.low %v712_v8, %v719_v16  ;;  %v822_v29 = vcombine.low %v814_v12, %v821_v17  ;;  %v838_v30 = vrot.slane %v824_v19, %v4819_v18  ;;  %v409_v31 = vadd.f32 %v4802_v7, %v382_v14 }
  0x2d   : > { %v410_v33 = vadd.f32 %v4802_v7, %v383_v20  ;;  %v427_v34 = vmax.f32 %v407_v23, 0.0  ;;  %v428_v35 = vmax.f32 %v408_v24, 0.0  ;;  %v504_v36 = vcombine.high %v502_v51, %v502_v51 }
  0x2e   : > { %v929_v37 = vpack.c.bf16 %v737_v21, %v720_v27  ;;  %v839_v38 = vcombine.low %v831_v22, %v838_v30  ;;  %v429_v39 = vmax.f32 %v409_v31, 0.0  ;;  %v390_v32 = vmul.f32 %v4795_v5, %v363_v15 }
  0x2f   : > { %v430_v41 = vmax.f32 %v410_v33, 0.0  ;;  %v511_v40 = vrot.slane %v427_v34, %v4819_v18  ;;  %v512_v42 = vcombine.high %v428_v35, %v428_v35  ;;  %v519_v43 = vrot.slane %v428_v35, %v4819_v18 }
  0x30   : > { %4107 = vmatmul.mubr.msk.bf16.vlgmr.msra.gmra.mrb[0].mxu0 %vm951_vm1, %v929_v37  ;;  %v932_v44 = vpack.c.bf16 %v839_v38, %v822_v29  ;;  %v535_v45 = vrot.slane %v429_v39, %v4819_v18  ;;  %v391_v47 = vmul.f32 %v4795_v5, %v364_v25  ;;  %v392_v48 = vmul.f32 %v4795_v5, %v365_v26  ;;  %v366_v38 = vld [vmem:[%s4807_s20 + $0x80] sm:$0xff]  ;;  %v367_v39 = vld [vmem:[%s4807_s20 + $0x88] sm:$0x3] }
  0x31   : > { %4110 = vmatprep.mubr.msk.bf16.mxu0 %vm4671_vm0, %v4670_v1  ;;  %v526_v49 = vrot.slane %v512_v42, %v4819_v18  ;;  %v527_v50 = vcombine.high %v519_v43, %v519_v43  ;;  %v543_v51 = vrot.slane %v430_v41, %v4819_v18  ;;  %v738_v52 = vcombine.low %v504_v36, %v511_v40 }
  0x32   : > { %4119 = vmatmul.mubr.msk.bf16.vlgmr.msra.gmra.mrb[0].mxu1 %vm951_vm1, %v932_v44  ;;  %v417_v53 = vadd.f32 %v4802_v7, %v390_v32  ;;  %v418_v54 = vadd.f32 %v4802_v7, %v391_v47  ;;  %v419_v55 = vadd.f32 %v4802_v7, %v392_v48  ;;  %v608_v56 = vcombine.high %v4843_v46, %v4843_v46  ;;  %v368_v44 = vld [vmem:[%s4807_s20 + $0x90] sm:$0xff] }
  0x33   : > { %v528_v59 = vcombine.high %v526_v49, %v526_v49  ;;  %v739_v60 = vcombine.low %v519_v43, %v527_v50  ;;  %v746_v61 = vrot.slane %v738_v52, %v4819_v18  ;;  %v756_v62 = vcombine.low %v535_v45, %v543_v51  ;;  %4122 = vmatprep.mubr.msk.bf16.mxu1 %vm4671_vm0, %v4670_v1 }
  0x34   : > { %v437_v63 = vmax.f32 %v417_v53, 0.0  ;;  %v438_v0 = vmax.f32 %v418_v54, 0.0  ;;  %v439_v2 = vmax.f32 %v419_v55, 0.0  ;;  %v622_v3 = vrot.slane %v608_v56, %v4819_v18 }
  0x35   : > { %v753_v8 = vrot.slane %v739_v60, %v4819_v18  ;;  %v755_v9 = vcombine.low %v526_v49, %v528_v59  ;;  %v770_v46 = vrot.slane %v756_v62, %v4819_v18  ;;  %v384_v10 = vmul.f32 %v4795_v5, %v357_v57 }
  0x36   : > { %v624_v11 = vcombine.high %v622_v3, %v622_v3  ;;  %v631_v12 = vrot.slane %v437_v63, %v4819_v18  ;;  %v632_v13 = vcombine.high %v438_v0, %v438_v0  ;;  %v639_v14 = vrot.slane %v438_v0, %v4819_v18 }
  0x37   : > { %v754_v15 = vcombine.low %v746_v61, %v753_v8  ;;  %v763_v16 = vrot.slane %v755_v9, %v4819_v18  ;;  %v655_v17 = vrot.slane %v439_v2, %v4819_v18  ;;  %v385_v19 = vmul.f32 %v4795_v5, %v4898_v4 }
  0x38   : > { %v646_v20 = vrot.slane %v632_v13, %v4819_v18  ;;  %v647_v21 = vcombine.high %v639_v14, %v639_v14  ;;  %v840_v22 = vcombine.low %v622_v3, %v624_v11  ;;  %v841_v23 = vcombine.low %v631_v12, %v639_v14 }
  0x39   : > { %v771_v24 = vcombine.low %v763_v16, %v770_v46  ;;  %v411_v25 = vadd.f32 %v4802_v7, %v384_v10  ;;  %v412_v26 = vadd.f32 %v4802_v7, %v385_v19  ;;  %v536_v27 = vcombine.high %v430_v41, %v430_v41 }
  0x3a   : > { %v648_v29 = vcombine.high %v646_v20, %v646_v20  ;;  %v848_v30 = vrot.slane %v840_v22, %v4819_v18  ;;  %v855_v31 = vrot.slane %v841_v23, %v4819_v18  ;;  %v857_v33 = vcombine.low %v647_v21, %v646_v20 }
  0x3b   : > { %v930_v34 = vpack.c.bf16 %v771_v24, %v754_v15  ;;  %v431_v35 = vmax.f32 %v411_v25, 0.0  ;;  %v432_v36 = vmax.f32 %v412_v26, 0.0  ;;  %v550_v37 = vrot.slane %v536_v27, %v4819_v18 }
  0x3c   : > { %v856_v32 = vcombine.low %v848_v30, %v855_v31  ;;  %v858_v40 = vcombine.low %v648_v29, %v655_v17  ;;  %v865_v42 = vrot.slane %v857_v33, %v4819_v18  ;;  %v551_v43 = vcombine.high %v543_v51, %v543_v51 }
  0x3d   : > { %4111 = vmatmul.mubr.msk.bf16.gmra.mrb[4].mxu0 %vm951_vm1, %v930_v34  ;;  %v552_v41 = vcombine.high %v550_v37, %v550_v37  ;;  %v559_v45 = vrot.slane %v431_v35, %v4819_v18  ;;  %v560_v47 = vcombine.high %v432_v36, %v432_v36  ;;  %v567_v48 = vrot.slane %v432_v36, %v4819_v18 }
  0x3e   : > { %v872_v49 = vrot.slane %v858_v40, %v4819_v18  ;;  %4114 = vmatprep.mubr.msk.bf16.mxu0 %vm4671_vm0, %v4670_v1  ;;  %v772_v50 = vcombine.low %v551_v43, %v550_v37  ;;  %v393_v52 = vmul.f32 %v4795_v5, %v366_v38  ;;  %v394_v53 = vmul.f32 %v4795_v5, %v367_v39  ;;  %v369_v40 = vld [vmem:[%s4807_s20 + $0x98] sm:$0x3] }
  0x3f   : > { %v574_v51 = vrot.slane %v560_v47, %v4819_v18  ;;  %v575_v54 = vcombine.high %v567_v48, %v567_v48  ;;  %v773_v55 = vcombine.low %v552_v41, %v559_v45  ;;  %v395_v56 = vmul.f32 %v4795_v5, %v368_v44 }
  0x40   : > { %v873_v57 = vcombine.low %v865_v42, %v872_v49  ;;  %v780_v59 = vrot.slane %v772_v50, %v4819_v18  ;;  %v420_v60 = vadd.f32 %v4802_v7, %v393_v52  ;;  %v421_v61 = vadd.f32 %v4802_v7, %v394_v53  ;;  %v4544_v50 = vld [vmem:[%s5702_s5 + $0x18] sm:$0xff]   ;;  %v4973_v52 = vld [vmem:[%s5701_s4] ss:$0 sm:$0xff] }
  0x41   : > { %v576_v62 = vcombine.high %v574_v51, %v574_v51  ;;  %v787_v63 = vrot.slane %v773_v55, %v4819_v18  ;;  %v789_v0 = vcombine.low %v567_v48, %v575_v54  ;;  %v422_v2 = vadd.f32 %v4802_v7, %v395_v56 }
  0x42   : > { %v933_v3 = vpack.c.bf16 %v873_v57, %v856_v32  ;;  %v440_v8 = vmax.f32 %v420_v60, 0.0  ;;  %v441_v9 = vmax.f32 %v421_v61, 0.0  ;;  %v4543_v32 = vld [vmem:[%s5702_s5 + $0x10] sm:$0xff]   ;;  %v396_v42 = vmul.f32 %v4795_v5, %v369_v40  ;;  %v4967_v5 = vld [vmem:[%s5702_s5] sm:$0xff]  }
  0x43   : > { %v790_v46 = vcombine.low %v574_v51, %v576_v62  ;;  %v797_v10 = vrot.slane %v789_v0, %v4819_v18  ;;  %v442_v11 = vmax.f32 %v422_v2, 0.0  ;;  %v788_v15 = vcombine.low %v780_v59, %v787_v63  ;;  %4134 = vmatprep.subr.bf16.mxu1 %v4543_v32 }
  0x44   : > { %4123 = vmatmul.mubr.msk.bf16.gmra.mrb[4].mxu1 %vm951_vm1, %v933_v3  ;;  %v656_v12 = vcombine.high %v440_v8, %v440_v8  ;;  %v663_v13 = vrot.slane %v440_v8, %v4819_v18  ;;  %v679_v14 = vrot.slane %v441_v9, %v4819_v18  ;;  %v423_v43 = vadd.f32 %v4802_v7, %v396_v42 }
  0x45   : > { %v804_v16 = vrot.slane %v790_v46, %v4819_v18  ;;  %4126 = vmatprep.mubr.msk.bf16.mxu1 %vm4671_vm0, %v4670_v1  ;;  %v680_v17 = vcombine.high %v442_v11, %v442_v11  ;;  %v687_v19 = vrot.slane %v442_v11, %v4819_v18  ;;  %4135 = vmatpush3.bf16.msra.mxu1 %v4543_v32  ;;  %v4981_v46 = vadd.s32 8, %v4797_v6 }
  0x46   : > { %v670_v20 = vrot.slane %v656_v12, %v4819_v18  ;;  %v671_v21 = vcombine.high %v663_v13, %v663_v13  ;;  %v443_v44 = vmax.f32 %v423_v43, 0.0  ;;  %4136 = vmatprep.subr.bf16.mxu1 %v4544_v50 }
  0x47   : > { %v805_v22 = vcombine.low %v797_v10, %v804_v16  ;;  %v694_v23 = vrot.slane %v680_v17, %v4819_v18  ;;  %v695_v24 = vcombine.high %v687_v19, %v687_v19  ;;  %v891_v25 = vcombine.low %v679_v14, %v687_v19 }
  0x48   : > { %v672_v26 = vcombine.high %v670_v20, %v670_v20  ;;  %v874_v27 = vcombine.low %v663_v13, %v671_v21  ;;  %v703_v45 = vrot.slane %v443_v44, %v4819_v18  ;;  %vm1365_vm2 = vcmp.le.s32.totalorder %v4981_v46, 8 }
  0x49   : > { %v931_v29 = vpack.c.bf16 %v805_v22, %v788_v15  ;;  %v892_v30 = vcombine.low %v695_v24, %v694_v23  ;;  %v899_v31 = vrot.slane %v891_v25, %v4819_v18  ;;  %v696_v41 = vcombine.high %v694_v23, %v694_v23  ;;  %4137 = vmatpush3.bf16.msra.mxu1 %v4544_v50 }
  0x4a   : > { %v875_v33 = vcombine.low %v670_v20, %v672_v26  ;;  %v882_v34 = vrot.slane %v874_v27, %v4819_v18  ;;  %4146 = vmatprep.subr.bf16.mxu1 %v4967_v5 }
  0x4b   : > { %4115 = vmatmul.mubr.msk.bf16.gmra.mrb[8].mxu0 %vm951_vm1, %v931_v29  ;;  %v906_v35 = vrot.slane %v892_v30, %v4819_v18  ;;  %v908_v47 = vcombine.low %v696_v41, %v703_v45 }
  0x4c   : > { %v889_v36 = vrot.slane %v875_v33, %v4819_v18 }
  0x4d   : > { %v907_v37 = vcombine.low %v899_v31, %v906_v35  ;;  %v915_v48 = vrot.slane %v908_v47, %v4819_v18 }
  0x4e   : > { %v890_v38 = vcombine.low %v882_v34, %v889_v36 }
  0x4f   : > { %v935_v49 = vpack.c.bf16 %v915_v48, %v915_v48 }
  0x50   : > { %v934_v39 = vpack.c.bf16 %v907_v37, %v890_v38 }
  0x52   : > { %4127 = vmatmul.mubr.msk.bf16.gmra.mrb[8].mxu1 %vm951_vm1, %v934_v39  ;;  %v5003_v39 = vrot.slane %v4670_v1, 1 }
  0x53   : > { %4130 = vmatprep.mubr.msk.bf16.mxu1 %vm4671_vm0, %v4670_v1 }
  0x5a   : > { %4131 = vmatmul.mubr.msk.bf16.gmra.mrb[12].mxu1 %vm951_vm1, %v935_v49 }
 0x103   : > { %v1007_v7 = vpop.f32.mrb[0].mxu0 }
 0x104   : > { %v4108_v53 = vpop.f32.mrb[1].mxu0 }
 0x105   : > { %v1010_v51 = vpop.f32.mrb[2].mxu0  ;;  %v1031_v54 = vpop.f32.mrb[0].mxu1 }
 0x106   : > { %v1011_v55 = vadd.f32 %v4973_v52, %v1010_v51  ;;  %v4109_v56 = vpop.f32.mrb[3].mxu0  ;;  %v1032_v57 = vadd.f32 %v4973_v52, %v1031_v54  ;;  %v4120_v59 = vpop.f32.mrb[1].mxu1 }
 0x107   : > { %v1034_v60 = vpop.f32.mrb[2].mxu1 }
 0x108   : > { %v1062_v61 = vmax.f32 %v1011_v55, 0.0  ;;  %v1067_v62 = vmax.f32 %v1032_v57, 0.0  ;;  %v1035_v63 = vadd.f32 %v4973_v52, %v1034_v60  ;;  %v4121_v0 = vpop.f32.mrb[3].mxu1 }
 0x10a   : > { %v1104_v2 = vcombine.high %v1062_v61, %v1062_v61  ;;  %v1111_v3 = vrot.slane %v1062_v61, %v4819_v18  ;;  %v1189_v8 = vcombine.high %v1067_v62, %v1067_v62  ;;  %v1196_v9 = vrot.slane %v1067_v62, %v4819_v18 }
 0x10b   : > { %v1068_v10 = vmax.f32 %v1035_v63, 0.0 }
 0x10c   : > { %v1118_v11 = vrot.slane %v1104_v2, %v4819_v18  ;;  %v1119_v12 = vcombine.high %v1111_v3, %v1111_v3  ;;  %v1203_v13 = vrot.slane %v1189_v8, %v4819_v18  ;;  %v1204_v14 = vcombine.high %v1196_v9, %v1196_v9 }
 0x10d   : > { %v1505_v15 = vrot.slane %v1196_v9, %v4819_v18  ;;  %v1206_v16 = vcombine.high %v1068_v10, %v1068_v10  ;;  %v1213_v17 = vrot.slane %v1068_v10, %v4819_v18 }
 0x10e   : > { %v1506_v19 = vcombine.low %v1204_v14, %v1203_v13  ;;  %v1205_v20 = vcombine.high %v1203_v13, %v1203_v13  ;;  %v1410_v23 = vcombine.low %v1119_v12, %v1118_v11  ;;  %v1120_v42 = vcombine.high %v1118_v11, %v1118_v11 }
 0x10f   : > { %v1220_v21 = vrot.slane %v1206_v16, %v4819_v18  ;;  %v1221_v22 = vcombine.high %v1213_v17, %v1213_v17  ;;  %v4992_v25 = vsel %vm1365_vm2, %v1505_v15, 0.0 }
 0x110   : > { %v1514_v24 = vrot.slane %v1506_v19, %v4819_v18  ;;  %v1015_v26 = vpop.f32.mrb[4].mxu0  ;;  %v1507_v30 = vcombine.low %v1205_v20, %v1213_v17  ;;  %v1418_v32 = vrot.slane %v1410_v23, %v4819_v18  ;;  %v1704_v40 = vrot.slane %v4992_v25, 1 }
 0x111   : > { %v1016_v27 = vadd.f32 %v4973_v52, %v1015_v26  ;;  %v1222_v29 = vcombine.high %v1220_v21, %v1220_v21  ;;  %v1529_v31 = vrot.slane %v1221_v22, %v4819_v18  ;;  %v4112_v33 = vpop.f32.mrb[5].mxu0  ;;  %v1925_v48 = vrot.slane %v4992_v25, 2 }
 0x112   : > { %v1018_v34 = vpop.f32.mrb[6].mxu0  ;;  %v1521_v36 = vrot.slane %v1507_v30, %v4819_v18 }
 0x113   : > { %v1063_v35 = vmax.f32 %v1016_v27, 0.0  ;;  %v5000_v37 = vsel %vm1365_vm2, %v1529_v31, 0.0  ;;  %v4113_v38 = vpop.f32.mrb[7].mxu0  ;;  %v1019_v43 = vadd.f32 %v4973_v52, %v1018_v34  ;;  %v5009_v47 = vcombine.low %v1220_v21, %v1222_v29 }
 0x114   : > { %v1522_v45 = vcombine.low %v1514_v24, %v1521_v36  ;;  %v1707_v49 = vrot.slane %v5000_v37, 1  ;;  %v1928_v50 = vrot.slane %v5000_v37, 2 }
 0x115   : > { %v1121_v44 = vcombine.high %v1063_v35, %v1063_v35  ;;  %v1128_v41 = vrot.slane %v1063_v35, %v4819_v18  ;;  %v1064_v7 = vmax.f32 %v1019_v43, 0.0  ;;  %v1538_v3 = vrot.slane %v5009_v47, %v4819_v18 }
 0x116   : > { %v5017_v55 = vsel %vm1342_vm3, %v1522_v45, 0.0 }
 0x117   : > { %v1135_v53 = vrot.slane %v1121_v44, %v4819_v18  ;;  %v1136_v51 = vcombine.high %v1128_v41, %v1128_v41  ;;  %v1411_v54 = vcombine.low %v1120_v42, %v1128_v41  ;;  %v1039_v56 = vpop.f32.mrb[4].mxu1  ;;  %v1138_v57 = vcombine.high %v1064_v7, %v1064_v7 }
 0x118   : > { %v1145_v59 = vrot.slane %v1064_v7, %v4819_v18  ;;  %v1040_v60 = vadd.f32 %v4973_v52, %v1039_v56  ;;  %v4124_v61 = vpop.f32.mrb[5].mxu1  ;;  %v1706_v62 = vrot.slane %v5017_v55, 1  ;;  %v1927_v22 = vrot.slane %v5017_v55, 2 }
 0x119   : > { %v1137_v63 = vcombine.high %v1135_v53, %v1135_v53  ;;  %v1425_v0 = vrot.slane %v1411_v54, %v4819_v18  ;;  %v1433_v2 = vrot.slane %v1136_v51, %v4819_v18  ;;  %v1042_v8 = vpop.f32.mrb[6].mxu1  ;;  %v5027_v9 = vrot.slane %v1138_v57, %v4819_v18 }
 0x11a   : > { %v1153_v10 = vcombine.high %v1145_v59, %v1145_v59  ;;  %v1069_v11 = vmax.f32 %v1040_v60, 0.0  ;;  %v1043_v12 = vadd.f32 %v4973_v52, %v1042_v8  ;;  %v4125_v13 = vpop.f32.mrb[7].mxu1  ;;  %v5035_v17 = vsel %vm1690_vm4, %v1706_v62, %v1707_v49 }
 0x11b   : > { %v1426_v14 = vcombine.low %v1418_v32, %v1425_v0  ;;  %v1434_v15 = vcombine.low %v1135_v53, %v1137_v63  ;;  %v5032_v16 = vsel %vm1365_vm2, %v1433_v2, 0.0  ;;  %v1457_v21 = vrot.slane %v5027_v9, %v4819_v18 }
 0x11c   : > { %v1695_v19 = vrot.slane %v5032_v16, 1  ;;  %v1435_v20 = vcombine.low %v1145_v59, %v1153_v10  ;;  %v1916_v24 = vrot.slane %v5032_v16, 2  ;;  %v1223_v26 = vcombine.high %v1069_v11, %v1069_v11 }
 0x11d   : > { %v1442_v23 = vrot.slane %v1434_v15, %v4819_v18  ;;  %v1230_v27 = vrot.slane %v1069_v11, %v4819_v18  ;;  %v5046_v29 = vsel %vm1342_vm3, %v1426_v14, 0.0  ;;  %v1651_v31 = vsel %vm1365_vm2, %v1457_v21, 0.0 }
 0x11e   : > { %v1449_v30 = vrot.slane %v1435_v20, %v4819_v18  ;;  %v1070_v33 = vmax.f32 %v1043_v12, 0.0  ;;  %v1023_v34 = vpop.f32.mrb[8].mxu0  ;;  %v1698_v35 = vrot.slane %v1651_v31, 1  ;;  %v1919_v36 = vrot.slane %v1651_v31, 2 }
 0x11f   : > { %v1237_v38 = vrot.slane %v1223_v26, %v4819_v18  ;;  %v1238_v32 = vcombine.high %v1230_v27, %v1230_v27  ;;  %v4116_v42 = vpop.f32.mrb[9].mxu0  ;;  %v1024_v45 = vadd.f32 %v4973_v52, %v1023_v34  ;;  %v1154_v11 = vcombine.high %v5027_v9, %v5027_v9 }
 0x120   : > { %v1450_v43 = vcombine.low %v1442_v23, %v1449_v30  ;;  %v1240_v44 = vcombine.high %v1070_v33, %v1070_v33  ;;  %v1247_v41 = vrot.slane %v1070_v33, %v4819_v18  ;;  %v1026_v47 = vpop.f32.mrb[10].mxu0 }
 0x121   : > { %v1531_v49 = vcombine.low %v1230_v27, %v1238_v32  ;;  %v1553_v7 = vrot.slane %v1237_v38, %v4819_v18  ;;  %v1239_v53 = vcombine.high %v1237_v38, %v1237_v38  ;;  %v1027_v51 = vadd.f32 %v4973_v52, %v1026_v47  ;;  %v4117_v54 = vpop.f32.mrb[11].mxu0 }
 0x122   : > { %v5058_v56 = vsel %vm1342_vm3, %v1450_v43, 0.0  ;;  %v1254_v57 = vrot.slane %v1240_v44, %v4819_v18  ;;  %v1255_v59 = vcombine.high %v1247_v41, %v1247_v41  ;;  %v1065_v60 = vmax.f32 %v1024_v45, 0.0 }
 0x123   : > { %v1697_v61 = vrot.slane %v5058_v56, 1  ;;  %v1918_v62 = vrot.slane %v5058_v56, 2  ;;  %v1545_v63 = vrot.slane %v1531_v49, %v4819_v18  ;;  %v5066_v0 = vsel %vm1365_vm2, %v1553_v7, 0.0 }
 0x124   : > { %v1710_v2 = vrot.slane %v5066_v0, 1  ;;  %v1256_v8 = vcombine.high %v1254_v57, %v1254_v57  ;;  %v1554_v10 = vcombine.low %v1239_v53, %v1247_v41  ;;  %v1555_v15 = vcombine.low %v1255_v59, %v1254_v57 }
 0x125   : > { %v5072_v12 = vsel %vm1690_vm4, %v1697_v61, %v1698_v35  ;;  %v5075_v13 = vsel %vm1911_vm5, %v1918_v62, %v1919_v36  ;;  %v1546_v14 = vcombine.low %v1538_v3, %v1545_v63  ;;  %v1047_v20 = vpop.f32.mrb[8].mxu1  ;;  %v1155_v26 = vcombine.high %v1065_v60, %v1065_v60 }
 0x126   : > { %v1562_v21 = vrot.slane %v1554_v10, %v4819_v18  ;;  %v1577_v23 = vrot.slane %v1256_v8, %v4819_v18  ;;  %v1162_v27 = vrot.slane %v1065_v60, %v4819_v18  ;;  %v4128_v30 = vpop.f32.mrb[9].mxu1  ;;  %v1931_v31 = vrot.slane %v5066_v0, 2 }
 0x127   : > { %v1569_v9 = vrot.slane %v1555_v15, %v4819_v18  ;;  %v1066_v33 = vmax.f32 %v1027_v51, 0.0  ;;  %v1048_v34 = vadd.f32 %v4973_v52, %v1047_v20  ;;  %v1050_v35 = vpop.f32.mrb[10].mxu1  ;;  %v1169_v36 = vrot.slane %v1155_v26, %v4819_v18 }
 0x128   : > { %v5085_v3 = vsel %vm1365_vm2, %v1577_v23, 0.0  ;;  %v1170_v38 = vcombine.high %v1162_v27, %v1162_v27  ;;  %v1458_v32 = vcombine.low %v1154_v11, %v1162_v27  ;;  %v4129_v42 = vpop.f32.mrb[11].mxu1  ;;  %v5090_v43 = vsel %vm1342_vm3, %v1546_v14, 0.0 }
 0x129   : > { %v1570_v44 = vcombine.low %v1562_v21, %v1569_v9  ;;  %v1713_v41 = vrot.slane %v5085_v3, 1  ;;  %v1172_v45 = vcombine.high %v1066_v33, %v1066_v33  ;;  %v1171_v47 = vcombine.high %v1169_v36, %v1169_v36 }
 0x12a   : > { %v1459_v49 = vcombine.low %v1170_v38, %v1169_v36  ;;  %v1466_v7 = vrot.slane %v1458_v32, %v4819_v18  ;;  %v1179_v53 = vrot.slane %v1066_v33, %v4819_v18  ;;  %v1071_v57 = vmax.f32 %v1048_v34, 0.0 }
 0x12b   : > { %v5097_v51 = vsel %vm1342_vm3, %v1570_v44, 0.0  ;;  %v1186_v54 = vrot.slane %v1172_v45, %v4819_v18  ;;  %v1051_v59 = vadd.f32 %v4973_v52, %v1050_v35  ;;  %v1481_v61 = vrot.slane %v1171_v47, %v4819_v18 }
 0x12c   : > { %v1473_v60 = vrot.slane %v1459_v49, %v4819_v18  ;;  %v1187_v62 = vcombine.high %v1179_v53, %v1179_v53  ;;  %v1694_v63 = vrot.slane %v5046_v29, 1  ;;  %v1257_v10 = vcombine.high %v1071_v57, %v1071_v57 }
 0x12d   : > { %v1188_v8 = vcombine.high %v1186_v54, %v1186_v54  ;;  %v1264_v11 = vrot.slane %v1071_v57, %v4819_v18  ;;  %v1072_v14 = vmax.f32 %v1051_v59, 0.0  ;;  %v1653_v20 = vsel %vm1365_vm2, %v1481_v61, 0.0 }
 0x12e   : > { %v1474_v15 = vcombine.low %v1466_v7, %v1473_v60  ;;  %v1482_v21 = vcombine.low %v1179_v53, %v1187_v62  ;;  %v5110_v52 = vsel %vm1690_vm4, %v1694_v63, %v1695_v19  ;;  %v1701_v23 = vrot.slane %v1653_v20, 1  ;;  %v4546_v62 = vld [vmem:[%s5702_s5 + $0x8] sm:$0xff]  }
 0x12f   : > { %v1922_v26 = vrot.slane %v1653_v20, 2  ;;  %v1483_v27 = vcombine.low %v1186_v54, %v1188_v8  ;;  %v1271_v30 = vrot.slane %v1257_v10, %v4819_v18  ;;  %v1272_v34 = vcombine.high %v1264_v11, %v1264_v11 }
 0x130   : > { %v5115_v9 = vsel %vm1342_vm3, %v1474_v15, 0.0  ;;  %v1490_v33 = vrot.slane %v1482_v21, %v4819_v18  ;;  %v1281_v35 = vrot.slane %v1072_v14, %v4819_v18  ;;  %v1723_v47 = vpack.c.bf16 %v5110_v52, %v5003_v39 }
 0x131   : > { %v5121_v36 = vpack.c.bf16 %v5115_v9, %v5058_v56  ;;  %v1700_v19 = vrot.slane %v5115_v9, 1  ;;  %v1921_v38 = vrot.slane %v5115_v9, 2  ;;  %v1497_v32 = vrot.slane %v1483_v27, %v4819_v18 }
 0x132   : > { %v1273_v42 = vcombine.high %v1271_v30, %v1271_v30  ;;  %v1578_v44 = vcombine.low %v1264_v11, %v1272_v34  ;;  %v1601_v45 = vrot.slane %v1281_v35, %v4819_v18  ;;  %v1709_v54 = vrot.slane %v5090_v43, 1  ;;  %4138 = vmatprep.mubr.msk.bf16.mxu1 %vm1744_vm6, %v1723_v47 }
 0x133   : > { %v5130_v49 = vsel %vm1690_vm4, %v1700_v19, %v1701_v23  ;;  %v5133_v7 = vsel %vm1911_vm5, %v1921_v38, %v1922_v26  ;;  %v1498_v53 = vcombine.low %v1490_v33, %v1497_v32  ;;  %v1934_v63 = vrot.slane %v5085_v3, 2 }
 0x134   : > { %v1579_v57 = vcombine.low %v1271_v30, %v1273_v42  ;;  %v1586_v59 = vrot.slane %v1578_v44, %v4819_v18  ;;  %v5139_v60 = vsel %vm1365_vm2, %v1601_v45, 0.0  ;;  %v5144_v61 = vpack.c.bf16 %v5130_v49, %v5072_v12  ;;  %v4547_v30 = vld [vmem:[%s5702_s5 + $0x20] sm:$0xff]  }
 0x135   : > { %v5152_v8 = vsel %vm1342_vm3, %v1498_v53, 0.0  ;;  %v2159_v46 = vrot.slane %v5139_v60, 1  ;;  %v5158_v10 = vsel %vm1690_vm4, %v1709_v54, %v1710_v2  ;;  %v1712_v20 = vrot.slane %v5097_v51, 1  ;;  %v5274_v53 = vld [vmem:[%s4807_s20] sm:$0xff]  ;;  %v5277_v54 = vld [vmem:[%s4807_s20 + $0x10] sm:$0xff] }
 0x136   : > { %v2051_v11 = vpack.c.bf16 %v5152_v8, %v5115_v9  ;;  %v1593_v14 = vrot.slane %v1579_v57, %v4819_v18  ;;  %4139 = vmatmul.mubr.msk.bf16.vlgmr.msra.gmra.mrb[16].mxu1 %vm1744_vm6, %v5144_v61  ;;  %v1703_v15 = vrot.slane %v5152_v8, 1  ;;  %v2269_v21 = vrot.slane %v5139_v60, 2  ;;  %v4554_v9 = vld [vmem:[%s5702_s5 + $0x58] sm:$0xff]  }
 0x137   : > { %4147 = vmatpush3.bf16.msra.mxu1 %v4967_v5  ;;  %v5171_v2 = vpack.c.bf16 %v5017_v55, %v5152_v8  ;;  %v5175_v23 = vpack.c.bf16 %v5097_v51, %v5090_v43  ;;  %v1915_v18 = vrot.slane %v5046_v29, 2  ;;  %v5186_v5 = vsel %vm1690_vm4, %v1712_v20, %v1713_v41 }
 0x138   : > { %v1594_v26 = vcombine.low %v1586_v59, %v1593_v14  ;;  %v5181_v27 = vsel %vm1690_vm4, %v1703_v15, %v1704_v40  ;;  %4148 = vmatprep.subr.bf16.mxu1 %v4546_v62  ;;  %v5193_v33 = vpack.c.bf16 %v5133_v7, %v5075_v13  ;;  %v5203_v3 = vpack.c.bf16 %v5186_v5, %v5158_v10  ;;  %v2697_v59 = vld [vmem:[%s5704_s7] sm:$0xf] }
 0x139   : > { %v5197_v34 = vpack.c.bf16 %v5035_v17, %v5181_v27  ;;  %v2163_v40 = vpack.c.bf16 %v5181_v27, %v5130_v49  ;;  %v5208_v41 = vsel %vm1911_vm5, %v1915_v18, %v1916_v24  ;;  %v1666_v19 = vpack.c.bf16 %v5046_v29, %v4670_v1  ;;  %v4562_v27 = vld [vmem:[%s5705_s8 + $0x8] sm:$0xff]  }
 0x13a   : > { %v5212_v35 = vsel %vm1342_vm3, %v1594_v26, 0.0  ;;  %v1924_v38 = vrot.slane %v5152_v8, 2  ;;  %v5222_v32 = vsel %vm1911_vm5, %v1927_v22, %v1928_v50  ;;  %v1930_v6 = vrot.slane %v5090_v43, 2  ;;  %v4557_v8 = vld [vmem:[%s5702_s5 + $0x70] sm:$0xff]  }
 0x13b   : > { %4142 = vmatprep.mubr.msk.bf16.mxu1 %vm1744_vm6, %v5197_v34  ;;  %4149 = vmatpush3.bf16.msra.mxu1 %v4546_v62  ;;  %v1933_v16 = vrot.slane %v5097_v51, 2  ;;  %v2050_v24 = vpack.c.bf16 %v5058_v56, %v5046_v29  ;;  %v2052_v42 = vpack.c.bf16 %v5090_v43, %v5017_v55  ;;  %v2053_v50 = vpack.c.bf16 %v5212_v35, %v5097_v51  ;;  %v1055_v51 = vpop.f32.mrb[12].mxu1 }
 0x13c   : > { %4158 = vmatprep.subr.bf16.mxu1 %v4547_v30  ;;  %v5235_v37 = vsel %vm1911_vm5, %v1924_v38, %v1925_v48  ;;  %v2162_v22 = vpack.c.bf16 %v5072_v12, %v5110_v52  ;;  %v2164_v29 = vpack.c.bf16 %v5158_v10, %v5035_v17  ;;  %v5252_v48 = vsel %vm1911_vm5, %v1930_v6, %v1931_v31  ;;  %v4561_v31 = vld [vmem:[%s5705_s8] sm:$0xff]   ;;  %v4553_v38 = vld [vmem:[%s5702_s5 + $0x50] sm:$0xff]   ;;  %v4556_v17 = vld [vmem:[%s5702_s5 + $0x68] sm:$0xff]   ;;  %v4132_v52 = vpop.f32.mrb[13].mxu1 }
 0x13d   : > { %v5245_v55 = vpack.c.bf16 %v5222_v32, %v5235_v37  ;;  %v2273_v25 = vpack.c.bf16 %v5235_v37, %v5133_v7  ;;  %v5255_v56 = vsel %vm1911_vm5, %v1933_v16, %v1934_v63  ;;  %v2158_v44 = vrot.slane %v5212_v35, 1  ;;  %4242 = vmatprep.subr.bf16.mxu0 %v4561_v31  ;;  %v4555_v12 = vld [vmem:[%s5702_s5 + $0x60] sm:$0xff]   ;;  %v1058_v49 = vpop.f32.mrb[14].mxu1  ;;  %v4558_v7 = vld [vmem:[%s5702_s5 + $0x78] sm:$0xff]  }
 0x13e   : > { %4143 = vmatmul.mubr.msk.bf16.gmra.mrb[20].mxu1 %vm1744_vm6, %v5203_v3  ;;  %v5261_v43 = vpack.c.bf16 %v5255_v56, %v5252_v48  ;;  %v2272_v45 = vpack.c.bf16 %v5075_v13, %v5208_v41  ;;  %v2274_v0 = vpack.c.bf16 %v5252_v48, %v5222_v32  ;;  %v2268_v47 = vrot.slane %v5212_v35, 2  ;;  %4243 = vmatpush3.bf16.msra.mxu0 %v4561_v31  ;;  %v4133_v13 = vpop.f32.mrb[15].mxu1  ;;  %v4559_v10 = vld [vmem:[%s5702_s5 + $0x80] sm:$0xff]   ;;  %v4580_v51 = vld [vmem:[%s4807_s20 + $0x38] sm:$0x3] }
 0x13f   : > { %4150 = vmatprep.mubr.msk.bf16.mxu1 %vm1744_vm6, %v1666_v19  ;;  %v2698_v57 = vpack.c.bf16 %v5277_v54, %v5274_v53  ;;  %v5285_v60 = vrot.slane %v4670_v1, 2  ;;  %v5288_v62 = vsel %vm1690_vm4, %v2158_v44, %v2159_v46  ;;  %v5292_v63 = vpack.c.bf16 %v4853_v58, %v4831_v28  ;;  %4480 = vmatprep.subr.msk.bf16.mxu0 %vm2800_vm7, %v2697_v59  ;;  %v4548_v58 = vld [vmem:[%s5702_s5 + $0x28] sm:$0xff]  }
 0x140   : > { %v2165_v14 = vpack.c.bf16 %v5288_v62, %v5186_v5  ;;  %v5297_v15 = vsel %vm1911_vm5, %v2268_v47, %v2269_v21  ;;  %v2478_v20 = vpack.c.bf16 %v5003_v39, %v5288_v62  ;;  %v2802_v28 = vsel %vm2800_vm7, %v2697_v59, 0  ;;  %v4549_v21 = vld [vmem:[%s5702_s5 + $0x30] sm:$0xff]   ;;  %v4550_v5 = vld [vmem:[%s5702_s5 + $0x38] sm:$0xff]   ;;  %v4552_v19 = vld [vmem:[%s5702_s5 + $0x48] sm:$0xff]  }
 0x141   : > { %4244 = vmatprep.mubr.msk.bf16.mxu0 %vm951_vm1, %v2698_v57  ;;  %v2275_v46 = vpack.c.bf16 %v5297_v15, %v5255_v56  ;;  %v2576_v18 = vpack.c.bf16 %v5285_v60, %v5297_v15  ;;  %v1944_v26 = vpack.c.bf16 %v5208_v41, %v5285_v60  ;;  %v4563_v47 = vld [vmem:[%s5705_s8 + $0x10] sm:$0xff]   ;;  %v2895_v52 = vrot.slane %v4580_v51, 1  ;;  %v4581_v13 = vld [vmem:[%s4807_s20 + $0x48] sm:$0x3] }
 0x142   : > { %4245 = vmatmul.mubr.msk.bf16.vlgmr.msra.gmra.mrb[12].mxu0 %vm951_vm1, %v5292_v63  ;;  %v2897_v49 = vrot.slane %v4898_v4, 1 }
 0x143   : > { %4253 = vmatpush3.bf16.msra.mxu0 %v2802_v28 }
 0x144   : > { %4262 = vmatprep.subr.bf16.mxu0 %v4562_v27 }
 0x146   : > { %4151 = vmatmul.mubr.msk.bf16.vlgmr.msra.gmra.mrb[16].mxu1 %vm1744_vm6, %v5121_v36 }
 0x147   : > { %4159 = vmatpush3.bf16.msra.mxu1 %v4547_v30  ;;  %4154 = vmatprep.mubr.msk.bf16.mxu1 %vm1744_vm6, %v5171_v2  ;;  %v4551_v30 = vld [vmem:[%s5702_s5 + $0x40] sm:$0xff]  }
 0x148   : > { %4160 = vmatprep.subr.bf16.mxu1 %v4548_v58 }
 0x14b   : > { %4161 = vmatpush3.bf16.msra.mxu1 %v4548_v58 }
 0x14c   : > { %4170 = vmatprep.subr.bf16.mxu1 %v4549_v21 }
 0x14e   : > { %4155 = vmatmul.mubr.msk.bf16.gmra.mrb[20].mxu1 %vm1744_vm6, %v5175_v23 }
 0x14f   : > { %4162 = vmatprep.mubr.msk.bf16.mxu1 %vm1744_vm6, %v1944_v26  ;;  %v5474_v26 = vld [vmem:[%s4807_s20 + $0x20] sm:$0xff] }
 0x156   : > { %4163 = vmatmul.mubr.msk.bf16.vlgmr.msra.gmra.mrb[16].mxu1 %vm1744_vm6, %v5193_v33 }
 0x157   : > { %4171 = vmatpush3.bf16.msra.mxu1 %v4549_v21  ;;  %4166 = vmatprep.mubr.msk.bf16.mxu1 %vm1744_vm6, %v5245_v55 }
 0x158   : > { %4172 = vmatprep.subr.bf16.mxu1 %v4550_v5 }
 0x15b   : > { %4173 = vmatpush3.bf16.msra.mxu1 %v4550_v5  ;;  %v2891_v5 = vrot.slane %v5474_v26, 1 }
 0x15c   : > { %4182 = vmatprep.subr.bf16.mxu1 %v4551_v30 }
 0x15e   : > { %4167 = vmatmul.mubr.msk.bf16.gmra.mrb[20].mxu1 %vm1744_vm6, %v5261_v43 }
 0x15f   : > { %4174 = vmatprep.mubr.msk.bf16.mxu1 %vm1744_vm6, %v2050_v24 }
 0x166   : > { %4175 = vmatmul.mubr.msk.bf16.vlgmr.msra.gmra.mrb[16].mxu1 %vm1744_vm6, %v2051_v11  ;;  %v4560_v11 = vld [vmem:[%s5702_s5 + $0x88] sm:$0xff]  }
 0x167   : > { %4183 = vmatpush3.bf16.msra.mxu1 %v4551_v30  ;;  %4178 = vmatprep.mubr.msk.bf16.mxu1 %vm1744_vm6, %v2052_v42  ;;  %v4578_v30 = vld [vmem:[%s4807_s20 + $0x28] sm:$0x3] }
 0x168   : > { %4184 = vmatprep.subr.bf16.mxu1 %v4552_v19 }
 0x16b   : > { %4185 = vmatpush3.bf16.msra.mxu1 %v4552_v19  ;;  %v2892_v19 = vrot.slane %v4578_v30, 1 }
 0x16c   : > { %4194 = vmatprep.subr.bf16.mxu1 %v4553_v38 }
 0x16e   : > { %4179 = vmatmul.mubr.msk.bf16.gmra.mrb[20].mxu1 %vm1744_vm6, %v2053_v50 }
 0x16f   : > { %4186 = vmatprep.mubr.msk.bf16.mxu1 %vm1744_vm6, %v2162_v22 }
 0x176   : > { %4187 = vmatmul.mubr.msk.bf16.vlgmr.msra.gmra.mrb[16].mxu1 %vm1744_vm6, %v2163_v40 }
 0x177   : > { %4195 = vmatpush3.bf16.msra.mxu1 %v4553_v38  ;;  %4190 = vmatprep.mubr.msk.bf16.mxu1 %vm1744_vm6, %v2164_v29 }
 0x178   : > { %4196 = vmatprep.subr.bf16.mxu1 %v4554_v9 }
 0x17b   : > { %4197 = vmatpush3.bf16.msra.mxu1 %v4554_v9 }
 0x17c   : > { %4206 = vmatprep.subr.bf16.mxu1 %v4555_v12 }
 0x17e   : > { %4191 = vmatmul.mubr.msk.bf16.gmra.mrb[20].mxu1 %vm1744_vm6, %v2165_v14 }
 0x17f   : > { %4198 = vmatprep.mubr.msk.bf16.mxu1 %vm1744_vm6, %v2272_v45  ;;  %v2888_v45 = vrot.slane %v5277_v54, 1 }
 0x186   : > { %4199 = vmatmul.mubr.msk.bf16.vlgmr.msra.gmra.mrb[16].mxu1 %vm1744_vm6, %v2273_v25  ;;  %v2885_v25 = vrot.slane %v5274_v53, 1 }
 0x187   : > { %4207 = vmatpush3.bf16.msra.mxu1 %v4555_v12  ;;  %4202 = vmatprep.mubr.msk.bf16.mxu1 %vm1744_vm6, %v2274_v0  ;;  %v5461_v0 = vld [vmem:[%s4807_s20 + $0x18] sm:$0x3]  ;;  %v5480_v12 = vld [vmem:[%s4807_s20 + $0x30] sm:$0xff] }
 0x188   : > { %4208 = vmatprep.subr.bf16.mxu1 %v4556_v17  ;;  %v2889_v31 = vrot.slane %v5461_v0, 1 }
 0x18b   : > { %4209 = vmatpush3.bf16.msra.mxu1 %v4556_v17  ;;  %v2894_v17 = vrot.slane %v5480_v12, 1 }
 0x18c   : > { %4218 = vmatprep.subr.bf16.mxu1 %v4557_v8 }
 0x18e   : > { %4203 = vmatmul.mubr.msk.bf16.gmra.mrb[20].mxu1 %vm1744_vm6, %v2275_v46 }
 0x18f   : > { %4210 = vmatprep.mubr.msk.bf16.mxu1 %vm1744_vm6, %v5121_v36  ;;  %v2378_v36 = vpack.c.bf16 %v4670_v1, %v5212_v35  ;;  %v5428_v1 = vld [vmem:[%s4807_s20 + $0x50] sm:$0xff] }
 0x190   : > { %v5432_v39 = vpack.c.bf16 %v5428_v1, %v4898_v4 }
 0x192   : > { %4248 = vmatprep.mubr.msk.bf16.mxu0 %vm951_vm1, %v5432_v39 }
 0x196   : > { %4211 = vmatmul.mubr.msk.bf16.vlgmr.msra.gmra.mrb[16].mxu1 %vm1744_vm6, %v5171_v2  ;;  %v5438_v2 = vld [vmem:[%s4807_s20 + $0x70] sm:$0xff] }
 0x197   : > { %4219 = vmatpush3.bf16.msra.mxu1 %v4557_v8  ;;  %4214 = vmatprep.mubr.msk.bf16.mxu1 %vm1744_vm6, %v5175_v23  ;;  %v2898_v8 = vrot.slane %v4581_v13, 1 }
 0x198   : > { %4220 = vmatprep.subr.bf16.mxu1 %v4558_v7 }
 0x199   : > { %v5498_v4 = vsel %vm1690_vm4, %v2897_v49, %v2898_v8 }
 0x19b   : > { %4221 = vmatpush3.bf16.msra.mxu1 %v4558_v7  ;;  %v2900_v7 = vrot.slane %v5428_v1, 1 }
 0x19c   : > { %4230 = vmatprep.subr.bf16.mxu1 %v4559_v10 }
 0x19e   : > { %4215 = vmatmul.mubr.msk.bf16.gmra.mrb[20].mxu1 %vm1744_vm6, %v2378_v36 }
 0x19f   : > { %4222 = vmatprep.mubr.msk.bf16.mxu1 %vm1744_vm6, %v5144_v61  ;;  %v5435_v61 = vld [vmem:[%s4807_s20 + $0x60] sm:$0xff] }
 0x1a0   : > { %v5442_v23 = vpack.c.bf16 %v5438_v2, %v5435_v61  ;;  %v3147_v49 = vpack.c.bf16 %v5435_v61, %v5428_v1 }
 0x1a2   : > { %4249 = vmatmul.mubr.msk.bf16.gmra.mrb[16].mxu0 %vm951_vm1, %v5442_v23 }
 0x1a6   : > { %4223 = vmatmul.mubr.msk.bf16.vlgmr.msra.gmra.mrb[16].mxu1 %vm1744_vm6, %v5197_v34 }
 0x1a7   : > { %4231 = vmatpush3.bf16.msra.mxu1 %v4559_v10  ;;  %4226 = vmatprep.mubr.msk.bf16.mxu1 %vm1744_vm6, %v5203_v3  ;;  %v4582_v10 = vld [vmem:[%s4807_s20 + $0x58] sm:$0x3] }
 0x1a8   : > { %4232 = vmatprep.subr.bf16.mxu1 %v4560_v11  ;;  %v2901_v36 = vrot.slane %v4582_v10, 1 }
 0x1ab   : > { %4233 = vmatpush3.bf16.msra.mxu1 %v4560_v11  ;;  %v5492_v11 = vsel %vm1690_vm4, %v2891_v5, %v2892_v19  ;;  %v3036_v5 = vrot.slane %v5438_v2, 2  ;;  %v4565_v19 = vld [vmem:[%s5705_s8 + $0x20] sm:$0xff]  }
 0x1ae   : > { %4227 = vmatmul.mubr.msk.bf16.gmra.mrb[20].mxu1 %vm1744_vm6, %v2478_v20 }
 0x1af   : > { %4234 = vmatprep.mubr.msk.bf16.mxu1 %vm1744_vm6, %v5193_v33  ;;  %v3920_v33 = vld [vmem:[%s5703_s6] ss:$0 sm:$0xff] }
 0x1b6   : > { %4235 = vmatmul.mubr.msk.bf16.vlgmr.msra.gmra.mrb[16].mxu1 %vm1744_vm6, %v5245_v55 }
 0x1b7   : > { %4238 = vmatprep.mubr.msk.bf16.mxu1 %vm1744_vm6, %v5261_v43  ;;  %v5456_v43 = vld [vmem:[%s4807_s20 + $0x8] sm:$0x3] }
 0x1b8   : > { %v2886_v44 = vrot.slane %v5456_v43, 1 }
 0x1ba   : > { %v2887_v46 = vsel %vm1690_vm4, %v2885_v25, %v2886_v44  ;;  %v3022_v44 = vrot.slane %v4578_v30, 2 }
 0x1be   : > { %4239 = vmatmul.mubr.msk.bf16.gmra.mrb[20].mxu1 %vm1744_vm6, %v2576_v18  ;;  %v5471_v18 = vsel %vm1690_vm4, %v2888_v45, %v2889_v31  ;;  %v3024_v45 = vrot.slane %v5480_v12, 2  ;;  %v4585_v31 = vld [vmem:[%s4807_s20 + $0x40] sm:$0xff] }
 0x1bf   : > { %v2917_v9 = vpack.c.bf16 %v5471_v18, %v2887_v46  ;;  %v3249_v8 = vpack.c.bf16 %v5492_v11, %v5471_v18 }
 0x289   : > { %v4236_v34 = vpop.f32.mrb[16].mxu1 }
 0x28a   : > { %v2679_v40 = vadd.f32 %v4236_v34, %v3920_v33  ;;  %v2631_v3 = vpop.f32.mrb[17].mxu1 }
 0x28b   : > { %v2677_v41 = vadd.f32 %v3920_v33, %v2631_v3  ;;  %v4237_v35 = vpop.f32.mrb[18].mxu1 }
 0x28c   : > { %v2680_v32 = vadd.f32 %v4237_v35, %v3920_v33  ;;  %v2634_v6 = vpop.f32.mrb[19].mxu1  ;;  %v2687_v24 = vmax.f32 %v2679_v40, 0.0  ;;  %v2903_v40 = vrot.slane %v5435_v61, 1 }
 0x28d   : > { %v2678_v16 = vadd.f32 %v3920_v33, %v2634_v6  ;;  %v2685_v37 = vmax.f32 %v2677_v41, 0.0  ;;  %v4583_v41 = vld [vmem:[%s4807_s20 + $0x68] sm:$0x3]  ;;  %v4584_v6 = vld [vmem:[%s4807_s20 + $0x78] sm:$0x3] }
 0x28e   : > { %v2688_v42 = vmax.f32 %v2680_v32, 0.0  ;;  %v2904_v35 = vrot.slane %v4583_v41, 1  ;;  %v2906_v32 = vrot.slane %v5438_v2, 1  ;;  %v3037_v30 = vrot.slane %v4584_v6, 2 }
 0x28f   : > { %v2686_v50 = vmax.f32 %v2678_v16, 0.0  ;;  %v2907_v16 = vrot.slane %v4584_v6, 1  ;;  %v4569_v6 = vld [vmem:[%s5705_s8 + $0x40] sm:$0xff]  }
 0x290   : > { %v2694_v22 = vpack.c.bf16 %v2688_v42, %v2687_v24  ;;  %v3015_v24 = vrot.slane %v5274_v53, 2  ;;  %v3016_v42 = vrot.slane %v5456_v43, 2  ;;  %v2905_v53 = vsel %vm1690_vm4, %v2903_v40, %v2904_v35 }
 0x291   : > { %v2693_v29 = vpack.c.bf16 %v2686_v50, %v2685_v37  ;;  %v4240_v55 = vpop.f32.mrb[20].mxu1  ;;  %v3018_v37 = vrot.slane %v5277_v54, 2  ;;  %v3019_v50 = vrot.slane %v5461_v0, 2  ;;  %v3025_v0 = vrot.slane %v4580_v51, 2 }
 0x292   : > { %v2683_v48 = vadd.f32 %v4240_v55, %v3920_v33  ;;  %v2647_v56 = vpop.f32.mrb[21].mxu1  ;;  %v3017_v55 = vsel %vm1911_vm5, %v3015_v24, %v3016_v42  ;;  %v3145_v51 = vpack.c.bf16 %v5474_v26, %v5277_v54  ;;  %v4586_v54 = vld [vmem:[%s4807_s20 + $0x80] sm:$0xff]  ;;  %v4589_v42 = vld [vmem:[%s4807_s20 + $0x98] sm:$0x3] }
 0x293   : > { %v2681_v57 = vadd.f32 %v3920_v33, %v2647_v56  ;;  %v4241_v59 = vpop.f32.mrb[22].mxu1  ;;  %4254 = vmatprep.mubr.msk.bf16.mxu0 %vm2787_vm8, %v2693_v29  ;;  %v5528_v29 = vsel %vm1690_vm4, %v2906_v32, %v2907_v16  ;;  %v5532_v25 = vsel %vm1911_vm5, %v3018_v37, %v3019_v50  ;;  %v3021_v56 = vrot.slane %v5474_v26, 2  ;;  %v4588_v16 = vld [vmem:[%s4807_s20 + $0x90] sm:$0xff] }
 0x294   : > { %v2684_v60 = vadd.f32 %v4241_v59, %v3920_v33  ;;  %v2650_v62 = vpop.f32.mrb[23].mxu1  ;;  %4255 = vmatmul.mubr.msk.bf16.vlgmr.msra.gmra.mrb[12].mxu0 %vm2787_vm8, %v2694_v22  ;;  %v2691_v15 = vmax.f32 %v2683_v48, 0.0  ;;  %v4564_v22 = vld [vmem:[%s5705_s8 + $0x18] sm:$0xff]   ;;  %v5535_v48 = vpack.c.bf16 %v5528_v29, %v2905_v53  ;;  %v3047_v43 = vpack.c.bf16 %v5532_v25, %v3017_v55 }
 0x295   : > { %v2682_v14 = vadd.f32 %v3920_v33, %v2650_v62  ;;  %4263 = vmatpush3.bf16.msra.mxu0 %v4562_v27  ;;  %v2689_v28 = vmax.f32 %v2681_v57, 0.0  ;;  %v5495_v27 = vsel %vm1690_vm4, %v2894_v17, %v2895_v52  ;;  %v5501_v33 = vsel %vm1690_vm4, %v2900_v7, %v2901_v36  ;;  %v4587_v7 = vld [vmem:[%s4807_s20 + $0x88] sm:$0x3]  ;;  %v4567_v36 = vld [vmem:[%s5705_s8 + $0x30] sm:$0xff]   ;;  %s337_s20 = sand.u32 1, %s4652_s10  }
 0x296   : > { %v2692_v20 = vmax.f32 %v2684_v60, 0.0  ;;  %4272 = vmatprep.subr.bf16.mxu0 %v4563_v47  ;;  %v5505_v34 = vpack.c.bf16 %v5495_v27, %v5492_v11  ;;  %v5510_v3 = vpack.c.bf16 %v5501_v33, %v5498_v4  ;;  %v3028_v57 = vrot.slane %v4581_v13, 2  ;;  %v4566_v13 = vld [vmem:[%s5705_s8 + $0x28] sm:$0xff]   ;;  %s3821_s23 = sshll.u32 %s337_s20, 6  ;;  %s5651_s12 = scalar_lea.sflag [#allocation3], %s337_s20 }
 0x297   : > { %v2690_v58 = vmax.f32 %v2682_v14, 0.0  ;;  %v3030_v59 = vrot.slane %v5428_v1, 2  ;;  %v3031_v60 = vrot.slane %v4582_v10, 2  ;;  %v3023_v62 = vsel %vm1911_vm5, %v3021_v56, %v3022_v44  ;;  %s339_s24 = scalar_lea.vmem [#allocation2], %s3821_s23  ;;  %s4596_s23 = scalar_lea.vmem %s4595_s18, 2048 }
 0x298   : > { %v2696_v21 = vpack.c.bf16 %v2692_v20, %v2691_v15  ;;  %v3026_v14 = vsel %vm1911_vm5, %v3024_v45, %v3025_v0  ;;  %v3146_v52 = vpack.c.bf16 %v4585_v31, %v5480_v12  ;;  %v3148_v26 = vpack.c.bf16 %v4586_v54, %v5438_v2  ;;  %s3741_s26 = sshll.u32 %s339_s24, 4  ;;  %s5646_s26 = int_to_ptr.vmem [resolvable:$true] %s3741_s26 }
 0x299   : > { %v2695_v38 = vpack.c.bf16 %v2690_v58, %v2689_v28  ;;  %v3032_v20 = vsel %vm1911_vm5, %v3030_v59, %v3031_v60  ;;  %v5549_v46 = vpack.c.bf16 %v3026_v14, %v3023_v62  ;;  %v3033_v28 = vrot.slane %v5435_v61, 2  ;;  %s4590_s15 = scalar_lea.vmem %s5646_s26, 1024  ;;  %p4597_p1 = scmp.lt.s32.totalorder %s5646_s26, %s4595_s18 }
 0x29a   : > { %v3250_v1 = vpack.c.bf16 %v5498_v4, %v5495_v27  ;;  %v3251_v61 = vpack.c.bf16 %v2905_v53, %v5501_v33  ;;  %v3245_v12 = vrot.slane %v4586_v54, 1  ;;  %v3246_v10 = vrot.slane %v4587_v7, 1  ;;  %p4591_p12 = scmp.ne.s32.totalorder %s5646_s26, %s4590_s15  ;;  %p4598_p2 = scmp.lt.s32.totalorder %s4596_s23, %s4590_s15 }
 0x29b   : > { %4258 = vmatprep.mubr.msk.bf16.mxu0 %vm2787_vm8, %v2695_v38  ;;  %v3351_v11 = vpack.c.bf16 %v3023_v62, %v5532_v25  ;;  %v3347_v33 = vrot.slane %v4586_v54, 2  ;;  %v3348_v40 = vrot.slane %v4587_v7, 2  ;;  %v3449_v24 = vpack.c.bf16 %v4588_v16, %v4586_v54 }
 0x29c   : > { %4259 = vmatmul.mubr.msk.bf16.gmra.mrb[16].mxu0 %vm2787_vm8, %v2696_v21  ;;  %v3034_v21 = vrot.slane %v4583_v41, 2  ;;  %v3247_v2 = vsel %vm1690_vm4, %v3245_v12, %v3246_v10  ;;  %v4568_v41 = vld [vmem:[%s5705_s8 + $0x38] sm:$0xff]   ;;  %v3538_v37 = vrot.slane %v4589_v42, 1  ;;  %v3628_v50 = vrot.slane %v4589_v42, 2  ;;  %p4592_p13 = pnand %p4591_p12, %p4766_p4  ;;  %p4599_p3 = por %p4598_p2, %p4597_p1 }
 0x29d   : > { %4264 = vmatprep.mubr.msk.bf16.mxu0 %vm951_vm1, %v2917_v9  ;;  %v3038_v9 = vsel %vm1911_vm5, %v3036_v5, %v3037_v30  ;;  %v3252_v18 = vpack.c.bf16 %v3247_v2, %v5528_v29  ;;  %v3349_v35 = vsel %vm1911_vm5, %v3347_v33, %v3348_v40 }
 0x29e   : > { %v3035_v38 = vsel %vm1911_vm5, %v3033_v28, %v3034_v21  ;;  %v3354_v32 = vpack.c.bf16 %v3349_v35, %v3038_v9  ;;  %p4593_p0 = pneg %p4592_p13 }
 0x29f   : > { %v5564_v17 = vpack.c.bf16 %v3038_v9, %v3035_v38  ;;  %v3353_v4 = vpack.c.bf16 %v3035_v38, %v3032_v20 }
 0x2a0   : > { %p4600_p5 = pnand %p4599_p3, %p4593_p0 }
 0x2a4   : > { %4265 = vmatmul.mubr.msk.bf16.vlgmr.msra.gmra.mrb[12].mxu0 %vm951_vm1, %v5505_v34 }
 0x2a5   : > { %4273 = vmatpush3.bf16.msra.mxu0 %v4563_v47  ;;  %4268 = vmatprep.mubr.msk.bf16.mxu0 %vm951_vm1, %v5510_v3  ;;  %v3027_v47 = vrot.slane %v4585_v31, 2 }
 0x2a6   : > { %4282 = vmatprep.subr.bf16.mxu0 %v4564_v22 }
 0x2a7   : > { %v3029_v15 = vsel %vm1911_vm5, %v3027_v47, %v3028_v57 }
 0x2a8   : > { %v5552_v58 = vpack.c.bf16 %v3032_v20, %v3029_v15  ;;  %v3352_v27 = vpack.c.bf16 %v3029_v15, %v3026_v14 }
 0x2ac   : > { %4269 = vmatmul.mubr.msk.bf16.gmra.mrb[16].mxu0 %vm951_vm1, %v5535_v48 }
 0x2ad   : > { %4274 = vmatprep.mubr.msk.bf16.mxu0 %vm951_vm1, %v3047_v43 }
 0x2b4   : > { %4275 = vmatmul.mubr.msk.bf16.vlgmr.msra.gmra.mrb[12].mxu0 %vm951_vm1, %v5549_v46 }
 0x2b5   : > { %4283 = vmatpush3.bf16.msra.mxu0 %v4564_v22  ;;  %4278 = vmatprep.mubr.msk.bf16.mxu0 %vm951_vm1, %v5552_v58 }
 0x2b6   : > { %4292 = vmatprep.subr.bf16.mxu0 %v4565_v19 }
 0x2bc   : > { %4279 = vmatmul.mubr.msk.bf16.gmra.mrb[16].mxu0 %vm951_vm1, %v5564_v17 }
 0x2bd   : > { %4284 = vmatprep.mubr.msk.bf16.mxu0 %vm951_vm1, %v3145_v51 }
 0x2c4   : > { %4285 = vmatmul.mubr.msk.bf16.vlgmr.msra.gmra.mrb[12].mxu0 %vm951_vm1, %v3146_v52 }
 0x2c5   : > { %4293 = vmatpush3.bf16.msra.mxu0 %v4565_v19  ;;  %4288 = vmatprep.mubr.msk.bf16.mxu0 %vm951_vm1, %v3147_v49 }
 0x2c6   : > { %4302 = vmatprep.subr.bf16.mxu0 %v4566_v13 }
 0x2cc   : > { %4289 = vmatmul.mubr.msk.bf16.gmra.mrb[16].mxu0 %vm951_vm1, %v3148_v26 }
 0x2cd   : > { %4294 = vmatprep.mubr.msk.bf16.mxu0 %vm951_vm1, %v3249_v8 }
 0x2d4   : > { %4295 = vmatmul.mubr.msk.bf16.vlgmr.msra.gmra.mrb[12].mxu0 %vm951_vm1, %v3250_v1 }
 0x2d5   : > { %4303 = vmatpush3.bf16.msra.mxu0 %v4566_v13  ;;  %4298 = vmatprep.mubr.msk.bf16.mxu0 %vm951_vm1, %v3251_v61 }
 0x2d6   : > { %4312 = vmatprep.subr.bf16.mxu0 %v4567_v36 }
 0x2dc   : > { %4299 = vmatmul.mubr.msk.bf16.gmra.mrb[16].mxu0 %vm951_vm1, %v3252_v18 }
 0x2dd   : > { %4304 = vmatprep.mubr.msk.bf16.mxu0 %vm951_vm1, %v3351_v11 }
 0x2e4   : > { %4305 = vmatmul.mubr.msk.bf16.vlgmr.msra.gmra.mrb[12].mxu0 %vm951_vm1, %v3352_v27 }
 0x2e5   : > { %4313 = vmatpush3.bf16.msra.mxu0 %v4567_v36  ;;  %4308 = vmatprep.mubr.msk.bf16.mxu0 %vm951_vm1, %v3353_v4 }
 0x2e6   : > { %4322 = vmatprep.subr.bf16.mxu0 %v4568_v41 }
 0x2ec   : > { %4309 = vmatmul.mubr.msk.bf16.gmra.mrb[16].mxu0 %vm951_vm1, %v3354_v32 }
 0x2ed   : > { %4314 = vmatprep.mubr.msk.bf16.mxu0 %vm951_vm1, %v5292_v63  ;;  %v3537_v63 = vrot.slane %v4588_v16, 1 }
 0x2f4   : > { %4315 = vmatmul.mubr.msk.bf16.vlgmr.msra.gmra.mrb[12].mxu0 %vm951_vm1, %v5432_v39  ;;  %v3539_v39 = vsel %vm1690_vm4, %v3537_v63, %v3538_v37 }
 0x2f5   : > { %4323 = vmatpush3.bf16.msra.mxu0 %v4568_v41  ;;  %4318 = vmatprep.mubr.msk.bf16.mxu0 %vm951_vm1, %v5442_v23  ;;  %v3541_v23 = vpack.c.bf16 %v3539_v39, %v3247_v2 }
 0x2f6   : > { %4332 = vmatprep.subr.bf16.mxu0 %v4569_v6 }
 0x2fc   : > { %4319 = vmatmul.mubr.msk.bf16.gmra.mrb[16].mxu0 %vm951_vm1, %v3449_v24 }
 0x2fd   : > { %4324 = vmatprep.mubr.msk.bf16.mxu0 %vm951_vm1, %v5505_v34  ;;  %v3627_v34 = vrot.slane %v4588_v16, 2 }
 0x304   : > { %4325 = vmatmul.mubr.msk.bf16.vlgmr.msra.gmra.mrb[12].mxu0 %vm951_vm1, %v5510_v3  ;;  %v3629_v3 = vsel %vm1911_vm5, %v3627_v34, %v3628_v50 }
 0x305   : > { %4333 = vmatpush3.bf16.msra.mxu0 %v4569_v6  ;;  %4328 = vmatprep.mubr.msk.bf16.mxu0 %vm951_vm1, %v5535_v48  ;;  %v3631_v22 = vpack.c.bf16 %v3629_v3, %v3349_v35 }
 0x30c   : > { %4329 = vmatmul.mubr.msk.bf16.gmra.mrb[16].mxu0 %vm951_vm1, %v3541_v23 }
 0x30d   : > { %4334 = vmatprep.mubr.msk.bf16.mxu0 %vm951_vm1, %v5549_v46 }
 0x314   : > { %4335 = vmatmul.mubr.msk.bf16.vlgmr.msra.gmra.mrb[12].mxu0 %vm951_vm1, %v5552_v58 }
 0x315   : > { %4338 = vmatprep.mubr.msk.bf16.mxu0 %vm951_vm1, %v5564_v17 }
 0x31c   : > { %4339 = vmatmul.mubr.msk.bf16.gmra.mrb[16].mxu0 %vm951_vm1, %v3631_v22 }
 0x3e7   : > { %v4336_v53 = vpop.f32.mrb[12].mxu0 }
 0x3e8   : > { %3719 = vst.msk [vmem:[%s339_s24 + $0x10] sm:$0xff] %vm2787_vm8, %v4336_v53  ;;  %v3678_v29 = vpop.f32.mrb[13].mxu0 }
 0x3e9   : > { %3717 = vst.msk [vmem:[%s339_s24] sm:$0xff] %vm2787_vm8, %v3678_v29  ;;  %v4337_v55 = vpop.f32.mrb[14].mxu0 }
 0x3ea   : > { %3720 = vst.msk [vmem:[%s339_s24 + $0x18] sm:$0xff] %vm2787_vm8, %v4337_v55  ;;  %v3681_v25 = vpop.f32.mrb[15].mxu0 }
 0x3eb   : > { %3718 = vst.msk [vmem:[%s339_s24 + $0x8] sm:$0xff] %vm2787_vm8, %v3681_v25 }
 0x3ef   : > { %v4340_v48 = vpop.f32.mrb[16].mxu0 }
 0x3f0   : > { %3723 = vst.msk [vmem:[%s339_s24 + $0x30] sm:$0xff] %vm2787_vm8, %v4340_v48  ;;  %v3694_v56 = vpop.f32.mrb[17].mxu0 }
 0x3f1   : > { %3721 = vst.msk [vmem:[%s339_s24 + $0x20] sm:$0xff] %vm2787_vm8, %v3694_v56  ;;  %v4341_v43 = vpop.f32.mrb[18].mxu0 }
 0x3f2   : > { %3724 = vst.msk [vmem:[%s339_s24 + $0x38] sm:$0xff] %vm2787_vm8, %v4341_v43  ;;  %v3697_v44 = vpop.f32.mrb[19].mxu0 }
 0x3f3   : > { %3722 = vst.msk [vmem:[%s339_s24 + $0x28] sm:$0xff] %vm2787_vm8, %v3697_v44 }
 0x3f4   : > { %4603 = shalt.err (!%p4600_p5)
}
 0x3f5   : > { %s4604_s20 = scalar_lea.hbm %s5644_s29, 1024  ;;  %s4608_s27 = scalar_lea.hbm %s5706_s9, 2048 }
 0x3f6   : > { %p4605_p6 = scmp.ne.s32.totalorder %s5644_s29, %s4604_s20  ;;  %p4609_p10 = scmp.lt.u32.totalorder %s5644_s29, %s5706_s9 }
 0x3f7   : > { %p4610_p11 = scmp.lt.u32.totalorder %s4608_s27, %s4604_s20  ;;  %p4612_p13 = scmp.lt.u32.totalorder %s4604_s20, %s5644_s29 }
 0x3f8   : > { %p4606_p7 = pnand %p4605_p6, %p4766_p4 }
 0x3f9   : > { %p4611_p12 = por %p4610_p11, %p4609_p10 }
 0x3fa   : > { %p4607_p9 = pneg %p4606_p7 }
 0x3fb   : > { %p4613_p0 = por %p4612_p13, %p4611_p12 }
 0x3fd   : > { %p4614_p1 = pnand %p4613_p0, %p4607_p9 }
 0x3ff   : > { %4617 = shalt.err (!%p4614_p1)
}
 0x400   : > { %s4674_s15 = smov 128   ;;  %s4675_s18 = smov 8  }
 0x401   : > { %4482 = dma.vmem_to_hbm [thread:$0]  (%p4766_p4), %s5646_s26, 1024, %s5644_s29, %s5651_s12, %s4674_s15, %s4674_s15, %s4675_s18  }
 0x402 PF: > { %p4488_p2 = scmp.ge.s32.totalorder %s4668_s14, 2  ;;  %s3756_s23 = sand.u32 1, %s4648_s30  }
 0x403   : > { %s3757_s20 = scalar_lea.sflag [#allocation3], %s3756_s23 }
 0x404   : > { %p4485_p3 = pnand %p4488_p2, %p4773_p8 }
 0x406   : > { %4643 = dma.done.wait (!%p4485_p3), %s3757_s20, 1024  }
 0x407   : > { %4645 = vsyncadd (!%p4485_p3), %s3757_s20, 4294966272  ;;  %s22_s14 = sadd.s32 1, %s4668_s14   ;;  %s5709_s30 = smov %s4652_s10 }
 0x408   : > { %p19_p5 = scmp.ge.s32.totalorder %s22_s14, 4   ;;  %s5710_s10 = smov %s4656_s11 }
 0x409   : > { %s5711_s11 = smov %s4779_s22  ;;  %s5712_s12 = smov %s4664_s13 }
 0x40a   : > { %s5713_s13 = smov %s5715_s17  ;;  %21 = sbr.rel (!%p19_p5) target bundleno = 4 (0x4), region = 108 }
 0x411   :  { %3762 = vsyncpa [#allocation3], 1 }
 0x412   :  { %3764 = vsyncpa [#allocation3 + $0x1], 1 }

</bundles_post_ra>
